<compile_context>
chip_gen: v7x
topology: tpu7x:2x2x1
jax: 0.10.0
libtpu: 0.0.40
codegen_flags: <defaults>
</compile_context>

<pallas_src>
import jax
import jax.numpy as jnp
from jax.experimental import pallas as pl
from jax.experimental.pallas import tpu as pltpu


def _round_up(x, m):
    return (x + m - 1) // m * m


# ---------------------------------------------------------------------------
# capability / hardware queries (advisory only; never affect correctness)
# ---------------------------------------------------------------------------

def _vmem_capacity_bytes():
    """Per-core VMEM capacity; defaults to 128 MiB if the query is unavailable."""
    try:
        info = pltpu.get_tpu_info()
        cap = getattr(info, "vmem_capacity_bytes", None)
        if cap:
            return int(cap)
    except Exception:  # hardware query only
        pass
    return 128 * 2 ** 20


_SINGLE_BUFFER_OK = None


def _single_buffer_supported():
    """One-time capability probe for pipeline_mode=pl.Buffered(1) on
    grid-invariant operands.  A tiny throwaway kernel is compiled and run so
    a failure here can never mask errors from the real kernel."""
    global _SINGLE_BUFFER_OK
    if _SINGLE_BUFFER_OK is not None:
        return _SINGLE_BUFFER_OK
    if not hasattr(pl, "Buffered"):
        _SINGLE_BUFFER_OK = False
        return False

    def _probe(x_ref, o_ref):
        o_ref[...] = x_ref[...] + 1.0

    try:
        out = pl.pallas_call(
            _probe,
            out_shape=jax.ShapeDtypeStruct((8, 128), jnp.float32),
            grid=(2,),
            in_specs=[pl.BlockSpec((8, 128), lambda i: (0, 0),
                                   pipeline_mode=pl.Buffered(1))],
            out_specs=pl.BlockSpec((8, 128), lambda i: (0, 0)),
        )(jnp.zeros((8, 128), jnp.float32))
        jax.block_until_ready(out)
        _SINGLE_BUFFER_OK = True
    except Exception:  # capability probe only
        _SINGLE_BUFFER_OK = False
    return _SINGLE_BUFFER_OK


# ---------------------------------------------------------------------------
# kernel
# ---------------------------------------------------------------------------

def _lora_qkv_kernel(s_ref, x_ref, wqkv_ref, b_ref, a_ref, bcat_ref, o_ref):
    """One (tm, 3D) row tile of the fused qkv + LoRA(q, v) projection."""
    d = b_ref.shape[1] // 3            # hidden dim D (static)
    cdt = wqkv_ref.dtype               # compute dtype (bf16 fast path)

    # x arrives in its native dtype; the cast runs on the VPU and hides under
    # the MXU work (no extra wrapper-side HBM pass over x).
    x = x_ref[...].astype(cdt)                                             # (tm, D)

    # Base qkv projection: (tm, D) @ (D, 3D), f32 accumulation on the MXU.
    qkv = jnp.dot(x, wqkv_ref[...], preferred_element_type=jnp.float32)    # (tm, 3D)
    qkv = qkv + b_ref[...]                                                 # f32 bias

    # Fused LoRA: one (D, 2r) down-proj, one block-diagonal (2r, 2D) up-proj.
    xa = jnp.dot(x, a_ref[...], preferred_element_type=jnp.float32)        # (tm, 2r)
    xa = xa * s_ref[0]                 # scale on the rank-sized intermediate
    lora = jnp.dot(xa.astype(cdt), bcat_ref[...],
                   preferred_element_type=jnp.float32)                     # (tm, 2D) = [dq | dv]

    # Lane-aligned q / k / v stores (unmasked when D % 128 == 0, as in ViT).
    o_ref[:, :d] = (qkv[:, :d] + lora[:, :d]).astype(o_ref.dtype)
    o_ref[:, d:2 * d] = qkv[:, d:2 * d].astype(o_ref.dtype)
    o_ref[:, 2 * d:] = (qkv[:, 2 * d:] + lora[:, d:]).astype(o_ref.dtype)


# ---------------------------------------------------------------------------
# wrappers
# ---------------------------------------------------------------------------

def prepare_lora_qkv_params(w_qkv, b_qkv, A_q, B_q, A_v, B_v,
                            *, compute_dtype=jnp.bfloat16):
    """Per-checkpoint weight preparation (hoisted out of the per-call path).

    w_qkv: (3D, D) torch qkv.weight      b_qkv: (3D,) torch qkv.bias
    A_*:   (r, D)  Linear(dim->rank).weight
    B_*:   (D, r)  Linear(rank->dim).weight
    Returns (W_qkv^T, bias_f32, A_cat, B_cat_blockdiag) in compute_dtype.
    """
    D3, D = w_qkv.shape
    r = A_q.shape[0]
    wqkv_t = jnp.asarray(w_qkv).T.astype(compute_dtype)                     # (D, 3D)
    bias = jnp.asarray(b_qkv).astype(jnp.float32).reshape(1, D3)            # f32, post-accum add
    a_cat = jnp.concatenate([jnp.asarray(A_q).T, jnp.asarray(A_v).T],
                            axis=1).astype(compute_dtype)                   # (D, 2r)
    b_cat = jnp.zeros((2 * r, 2 * D), jnp.float32)
    b_cat = b_cat.at[:r, :D].set(jnp.asarray(B_q, jnp.float32).T)
    b_cat = b_cat.at[r:, D:].set(jnp.asarray(B_v, jnp.float32).T)
    b_cat = b_cat.astype(compute_dtype)                                     # (2r, 2D) block-diag
    return wqkv_t, bias, a_cat, b_cat


def lora_qkv_forward_prepared(x, params, scale, *, tm=None, out_dtype=None):
    """x: (B, N, D) in native dtype; params from prepare_lora_qkv_params;
    scale: (1,) f32 (scaling_factor[0] modeled as a scalar gain).
    out_dtype=jnp.bfloat16 halves the dominant HBM write stream if downstream
    tolerates it; default preserves x.dtype."""
    wqkv_t, bias, a_cat, b_cat = params
    B, N, D = x.shape
    assert wqkv_t.shape == (D, 3 * D)
    r2 = a_cat.shape[1]                       # 2 * rank
    out_dtype = x.dtype if out_dtype is None else out_dtype

    M = B * N
    x2d = x.reshape(M, D)                     # no cast / pad passes in HBM

    # ---- per-generation tiling & VMEM budget -------------------------------
    vmem_cap = _vmem_capacity_bytes()
    if vmem_cap <= 64 * 2 ** 20:              # v7x: 64 MiB per TensorCore
        vmem_limit_cap, tm_max = 48 * 2 ** 20, 512
    else:                                     # v5e / v6e: 128 MiB
        vmem_limit_cap, tm_max = 100 * 2 ** 20, 1024

    tm = tm_max if tm is None else tm
    tm = max(16, min(_round_up(tm, 16), tm_max, _round_up(M, 16)))   # 16: bf16 sublane tile
    # Keep >= 2 grid steps so both v7x TensorCores get work (negligible cost
    # elsewhere); the ragged last block is handled by Pallas masking.
    if M >= 32 and pl.cdiv(M, tm) < 2:
        tm = _round_up(pl.cdiv(M, 2), 16)
    steps = pl.cdiv(M, tm)

    single_buf = _single_buffer_supported()
    cd = jnp.dtype(wqkv_t.dtype).itemsize
    xd = jnp.dtype(x.dtype).itemsize
    od = jnp.dtype(out_dtype).itemsize
    inv_bufs = 1 if single_buf else 2
    weights_bytes = (D * 3 * D + D * r2 + r2 * 2 * D) * cd + 3 * D * 4
    est = inv_bufs * weights_bytes
    est += 2 * tm * D * xd + 2 * tm * 3 * D * od            # double-buffered x / out tiles
    est += tm * (3 * D + 2 * D + D) * 4 + tm * 128 * 4      # f32 intermediates + padded xa
    vmem_limit = int(min(vmem_limit_cap, max(32 * 2 ** 20, 2 * est)))

    def inv_spec(shape):
        # Grid-invariant operand: fetched once; single-buffered when supported.
        if single_buf:
            return pl.BlockSpec(shape, lambda i: (0, 0),
                                pipeline_mode=pl.Buffered(1))
        return pl.BlockSpec(shape, lambda i: (0, 0))

    s = jnp.asarray(scale, jnp.float32).reshape(1)

    out2d = pl.pallas_call(
        _lora_qkv_kernel,
        out_shape=jax.ShapeDtypeStruct((M, 3 * D), out_dtype),
        grid_spec=pltpu.PrefetchScalarGridSpec(
            num_scalar_prefetch=0,
            grid=(steps,),
            in_specs=[
                pl.BlockSpec(memory_space=pltpu.MemorySpace.SMEM),  # scale
                pl.BlockSpec((tm, D), lambda i: (i, 0)),            # x row tile (native dtype)
                inv_spec((D, 3 * D)),                               # W_qkv^T
                inv_spec((1, 3 * D)),                               # bias (f32)
                inv_spec((D, r2)),                                  # [A_q^T | A_v^T]
                inv_spec((r2, 2 * D)),                              # block-diag [B_q^T ; B_v^T]
            ],
            out_specs=pl.BlockSpec((tm, 3 * D), lambda i: (i, 0)),
        ),
        compiler_params=pltpu.CompilerParams(
            dimension_semantics=("parallel",),
            vmem_limit_bytes=vmem_limit),
    )(s, x2d, wqkv_t, bias, a_cat, b_cat)

    return out2d.reshape(B, N, 3 * D)


def lora_qkv_forward(x, w_qkv, b_qkv, A_q, B_q, A_v, B_v, scale, *,
                     tm=None, compute_dtype=jnp.bfloat16, out_dtype=None):
    """Convenience wrapper. For repeated eval calls, cache the result of
    prepare_lora_qkv_params per checkpoint and call lora_qkv_forward_prepared."""
    params = prepare_lora_qkv_params(w_qkv, b_qkv, A_q, B_q, A_v, B_v,
                                     compute_dtype=compute_dtype)
    return lora_qkv_forward_prepared(x, params, scale, tm=tm, out_dtype=out_dtype)


# ---------------------------------------------------------------------------
# self-test
# ---------------------------------------------------------------------------

if __name__ == "__main__":
    # Make the pure-JAX f32 reference (and the in-kernel f32 path) full
    # precision so the exactness check can be tight.
    jax.config.update("jax_default_matmul_precision", "highest")

    key = jax.random.PRNGKey(0)
    Bsz, N, D, r = 2, 20, 128, 4                 # batch, seq, hidden(dim), rank
    ks = jax.random.split(key, 8)

    # Deterministic synthetic parameters (shapes from the module's __init__):
    x = jax.random.normal(ks[0], (Bsz, N, D), jnp.float32)
    w_qkv = jax.random.normal(ks[1], (3 * D, D), jnp.float32) * 0.05  # qkv.weight
    b_qkv = jax.random.normal(ks[2], (3 * D,), jnp.float32) * 0.01    # qkv.bias
    A_q = jax.random.normal(ks[3], (r, D), jnp.float32) * 0.05        # w_a_linear_q.weight
    B_q = jax.random.normal(ks[4], (D, r), jnp.float32) * 0.05        # w_b_linear_q.weight
    A_v = jax.random.normal(ks[5], (r, D), jnp.float32) * 0.05        # w_a_linear_v.weight
    B_v = jax.random.normal(ks[6], (D, r), jnp.float32) * 0.05        # w_b_linear_v.weight
    scale = jnp.array([0.7], jnp.float32)        # scaling_factor[0] as scalar gain

    # pure-JAX reference of the effective forward
    new_q = scale[0] * (x @ A_q.T @ B_q.T)
    new_v = scale[0] * (x @ A_v.T @ B_v.T)
    ref = x @ w_qkv.T + b_qkv
    ref = ref.at[:, :, :D].add(new_q).at[:, :, 2 * D:].add(new_v)

    # 1) Exact f32 path; tm=16 exercises a 3-step grid with a ragged last block
    #    (M = 40 rows, no wrapper-side padding).
    params_f32 = prepare_lora_qkv_params(w_qkv, b_qkv, A_q, B_q, A_v, B_v,
                                         compute_dtype=jnp.float32)
    out_f32 = jax.block_until_ready(
        lora_qkv_forward_prepared(x, params_f32, scale, tm=16))
    assert out_f32.shape == (Bsz, N, 3 * D)
    assert jnp.allclose(out_f32, ref, atol=1e-4, rtol=1e-4)

    # 2) Fast path: bf16 matmul operands (cast in-kernel), f32 MXU accumulation,
    #    auto per-generation tiling (collapses to a 2-step grid here).
    params_bf16 = prepare_lora_qkv_params(w_qkv, b_qkv, A_q, B_q, A_v, B_v)
    out_bf16 = jax.block_until_ready(
        lora_qkv_forward_prepared(x, params_bf16, scale))
    assert out_bf16.shape == (Bsz, N, 3 * D)
    assert jnp.allclose(out_bf16, ref, atol=3e-2, rtol=3e-2)

    print("KERNEL_OK")
</pallas_src>

<mosaic_0001>
module attributes {stable_mosaic.version = 11 : i64} {
  func.func @_probe(%arg0: i32, %arg1: memref<8x128xf32, #tpu.memory_space<vmem>>, %arg2: memref<8x128xf32, #tpu.memory_space<vmem>>) attributes {dimension_semantics = [#tpu.dimension_semantics<arbitrary>], iteration_bounds = array<i64: 2>, scalar_prefetch = 0 : i64, scratch_operands = 0 : i64, tpu.core_type = #tpu.core_type<tc>, window_params = [{pipeline_mode = #tpu.pipeline_mode<synchronous>, transform_indices = @transform_0, window_bounds = array<i64: 8, 128>}, {pipeline_mode = #tpu.pipeline_mode<synchronous>, transform_indices = @transform_1, window_bounds = array<i64: 8, 128>}]} {
    %c0 = arith.constant 0 : index
    %c0_0 = arith.constant 0 : index
    %0 = vector.load %arg1[%c0, %c0_0] : memref<8x128xf32, #tpu.memory_space<vmem>>, vector<8x128xf32>
    %cst = arith.constant 1.000000e+00 : f32
    %1 = vector.broadcast %cst : f32 to vector<8x128xf32>
    %2 = arith.addf %0, %1 : vector<8x128xf32>
    %c0_1 = arith.constant 0 : index
    %c0_2 = arith.constant 0 : index
    %3 = vector.load %arg2[%c0_1, %c0_2] : memref<8x128xf32, #tpu.memory_space<vmem>>, vector<8x128xf32>
    tpu.vector_store %arg2[%c0_1, %c0_2], %2 {strides = array<i32>} : memref<8x128xf32, #tpu.memory_space<vmem>>, vector<8x128xf32>,
    return
  }
  func.func @transform_0(%arg0: i32) -> (i32, i32) {
    %c0_i32 = arith.constant 0 : i32
    %c0_i32_0 = arith.constant 0 : i32
    %c0_i32_1 = arith.constant 0 : i32
    return %c0_i32, %c0_i32_0 : i32, i32
  }
  func.func @transform_1(%arg0: i32) -> (i32, i32) {
    %c0_i32 = arith.constant 0 : i32
    %c0_i32_0 = arith.constant 0 : i32
    %c0_i32_1 = arith.constant 0 : i32
    return %c0_i32, %c0_i32_0 : i32, i32
  }
}

module attributes {stable_mosaic.version = 11 : i64} {
  func.func @_lora_qkv_kernel(%arg0: i32, %arg1: memref<1xf32, #tpu.memory_space<smem>>, %arg2: memref<16x128xf32, #tpu.memory_space<vmem>>, %arg3: memref<128x384xf32, #tpu.memory_space<vmem>>, %arg4: memref<1x384xf32, #tpu.memory_space<vmem>>, %arg5: memref<128x8xf32, #tpu.memory_space<vmem>>, %arg6: memref<8x256xf32, #tpu.memory_space<vmem>>, %arg7: memref<16x384xf32, #tpu.memory_space<vmem>>) attributes {dimension_semantics = [#tpu.dimension_semantics<parallel>], iteration_bounds = array<i64: 3>, scalar_prefetch = 0 : i64, scratch_operands = 0 : i64, tpu.core_type = #tpu.core_type<tc>, window_params = [{transform_indices = @transform_0, window_bounds = array<i64: 1>}, {transform_indices = @transform_1, window_bounds = array<i64: 16, 128>}, {pipeline_mode = #tpu.pipeline_mode<synchronous>, transform_indices = @transform_2, window_bounds = array<i64: 128, 384>}, {pipeline_mode = #tpu.pipeline_mode<synchronous>, transform_indices = @transform_3, window_bounds = array<i64: 1, 384>}, {pipeline_mode = #tpu.pipeline_mode<synchronous>, transform_indices = @transform_4, window_bounds = array<i64: 128, 8>}, {pipeline_mode = #tpu.pipeline_mode<synchronous>, transform_indices = @transform_5, window_bounds = array<i64: 8, 256>}, {transform_indices = @transform_6, window_bounds = array<i64: 16, 384>}]} {
    %c0 = arith.constant 0 : index
    %c0_0 = arith.constant 0 : index
    %0 = vector.load %arg2[%c0, %c0_0] : memref<16x128xf32, #tpu.memory_space<vmem>>, vector<16x128xf32>
    %c0_1 = arith.constant 0 : index
    %c0_2 = arith.constant 0 : index
    %1 = vector.load %arg3[%c0_1, %c0_2] : memref<128x384xf32, #tpu.memory_space<vmem>>, vector<128x384xf32>
    %cst = arith.constant dense<0.000000e+00> : vector<16x384xf32>
    %2 = tpu.matmul %0, %1, %cst {dimension_numbers = #tpu.dot_dimension_numbers<[1], [0], [0], [1], [0, 0, 1, 1], [], []>, precision = #tpu.contract_precision<fp32>} : vector<16x128xf32>, vector<128x384xf32>, vector<16x384xf32> -> vector<16x384xf32>
    %c0_3 = arith.constant 0 : index
    %c0_4 = arith.constant 0 : index
    %3 = vector.load %arg4[%c0_3, %c0_4] : memref<1x384xf32, #tpu.memory_space<vmem>>, vector<1x384xf32>
    %4 = vector.broadcast %3 : vector<1x384xf32> to vector<16x384xf32>
    %5 = arith.addf %2, %4 : vector<16x384xf32>
    %c0_5 = arith.constant 0 : index
    %c0_6 = arith.constant 0 : index
    %6 = vector.load %arg5[%c0_5, %c0_6] : memref<128x8xf32, #tpu.memory_space<vmem>>, vector<128x8xf32>
    %cst_7 = arith.constant dense<0.000000e+00> : vector<16x8xf32>
    %7 = tpu.matmul %0, %6, %cst_7 {dimension_numbers = #tpu.dot_dimension_numbers<[1], [0], [0], [1], [0, 0, 1, 1], [], []>, precision = #tpu.contract_precision<fp32>} : vector<16x128xf32>, vector<128x8xf32>, vector<16x8xf32> -> vector<16x8xf32>
    %c0_8 = arith.constant 0 : index
    %8 = memref.load %arg1[%c0_8] : memref<1xf32, #tpu.memory_space<smem>>
    %9 = vector.broadcast %8 : f32 to vector<16x8xf32>
    %10 = arith.mulf %7, %9 : vector<16x8xf32>
    %c0_9 = arith.constant 0 : index
    %c0_10 = arith.constant 0 : index
    %11 = vector.load %arg6[%c0_9, %c0_10] : memref<8x256xf32, #tpu.memory_space<vmem>>, vector<8x256xf32>
    %cst_11 = arith.constant dense<0.000000e+00> : vector<16x256xf32>
    %12 = tpu.matmul %10, %11, %cst_11 {dimension_numbers = #tpu.dot_dimension_numbers<[1], [0], [0], [1], [0, 0, 1, 1], [], []>, precision = #tpu.contract_precision<fp32>} : vector<16x8xf32>, vector<8x256xf32>, vector<16x256xf32> -> vector<16x256xf32>
    %13 = vector.extract_strided_slice %5 {offsets = [0, 0], sizes = [16, 128], strides = [1, 1]} : vector<16x384xf32> to vector<16x128xf32>
    %14 = vector.extract_strided_slice %12 {offsets = [0, 0], sizes = [16, 128], strides = [1, 1]} : vector<16x256xf32> to vector<16x128xf32>
    %15 = arith.addf %13, %14 : vector<16x128xf32>
    %c0_12 = arith.constant 0 : index
    %c0_13 = arith.constant 0 : index
    %16 = vector.load %arg7[%c0_12, %c0_13] : memref<16x384xf32, #tpu.memory_space<vmem>>, vector<16x128xf32>
    tpu.vector_store %arg7[%c0_12, %c0_13], %15 {strides = array<i32>} : memref<16x384xf32, #tpu.memory_space<vmem>>, vector<16x128xf32>,
    %17 = vector.extract_strided_slice %5 {offsets = [0, 128], sizes = [16, 128], strides = [1, 1]} : vector<16x384xf32> to vector<16x128xf32>
    %c0_14 = arith.constant 0 : index
    %c128 = arith.constant 128 : index
    %18 = vector.load %arg7[%c0_14, %c128] : memref<16x384xf32, #tpu.memory_space<vmem>>, vector<16x128xf32>
    tpu.vector_store %arg7[%c0_14, %c128], %17 {strides = array<i32>} : memref<16x384xf32, #tpu.memory_space<vmem>>, vector<16x128xf32>,
    %19 = vector.extract_strided_slice %5 {offsets = [0, 256], sizes = [16, 128], strides = [1, 1]} : vector<16x384xf32> to vector<16x128xf32>
    %20 = vector.extract_strided_slice %12 {offsets = [0, 128], sizes = [16, 128], strides = [1, 1]} : vector<16x256xf32> to vector<16x128xf32>
    %21 = arith.addf %19, %20 : vector<16x128xf32>
    %c0_15 = arith.constant 0 : index
    %c256 = arith.constant 256 : index
    %22 = vector.load %arg7[%c0_15, %c256] : memref<16x384xf32, #tpu.memory_space<vmem>>, vector<16x128xf32>
    tpu.vector_store %arg7[%c0_15, %c256], %21 {strides = array<i32>} : memref<16x384xf32, #tpu.memory_space<vmem>>, vector<16x128xf32>,
    return
  }
  func.func @transform_0(%arg0: i32) -> i32 {
    %c0_i32 = arith.constant 0 : i32
    %c0_i32_0 = arith.constant 0 : i32
    return %c0_i32 : i32
  }
  func.func @transform_1(%arg0: i32) -> (i32, i32) {
    %c0_i32 = arith.constant 0 : i32
    %c0_i32_0 = arith.constant 0 : i32
    return %arg0, %c0_i32 : i32, i32
  }
  func.func @transform_2(%arg0: i32) -> (i32, i32) {
    %c0_i32 = arith.constant 0 : i32
    %c0_i32_0 = arith.constant 0 : i32
    %c0_i32_1 = arith.constant 0 : i32
    return %c0_i32, %c0_i32_0 : i32, i32
  }
  func.func @transform_3(%arg0: i32) -> (i32, i32) {
    %c0_i32 = arith.constant 0 : i32
    %c0_i32_0 = arith.constant 0 : i32
    %c0_i32_1 = arith.constant 0 : i32
    return %c0_i32, %c0_i32_0 : i32, i32
  }
  func.func @transform_4(%arg0: i32) -> (i32, i32) {
    %c0_i32 = arith.constant 0 : i32
    %c0_i32_0 = arith.constant 0 : i32
    %c0_i32_1 = arith.constant 0 : i32
    return %c0_i32, %c0_i32_0 : i32, i32
  }
  func.func @transform_5(%arg0: i32) -> (i32, i32) {
    %c0_i32 = arith.constant 0 : i32
    %c0_i32_0 = arith.constant 0 : i32
    %c0_i32_1 = arith.constant 0 : i32
    return %c0_i32, %c0_i32_0 : i32, i32
  }
  func.func @transform_6(%arg0: i32) -> (i32, i32) {
    %c0_i32 = arith.constant 0 : i32
    %c0_i32_0 = arith.constant 0 : i32
    return %arg0, %c0_i32 : i32, i32
  }
}

</mosaic_0001>

<bundles_post_ra>
// kernel: tpu_custom_call.1
= control target key start
LH: loop header
LB: loop body
LE: loop exit
PB: predicated region body
PF: predicated region fallthrough
CT: control target
= control target key end

     0   :  { %6 = vsyncpa [#allocation3], 0  ;;  %s341_s0 = inlined_call_operand.hbm [shape: f32[8,128], index: 0, kind: input, shape index: {}]   ;;  %s342_s1 = inlined_call_operand.hbm [shape: f32[8,128], index: 1, kind: output, shape index: {}]  }
   0x1   :  { %7 = vsyncpa [#allocation4], 0  ;;  %s262_s6 = smov 0  }
   0x2 LB: > { %s145_s7 = sadd.s32 4294967295, %s248_s6   ;;  %p146_p0 = scmp.ge.s32.totalorder %s248_s6, 1  ;;  %s248_s6 = sphi %s262_s6, %s13_s6  }
   0x3   : > { %p60_p1 = scmp.lt.s32.totalorder %s248_s6, 3  ;;  %p276_p3 = scmp.eq.s32.totalorder %s145_s7, 0 }
   0x4   : > { %s250_s10 = smov [#allocation2]   ;;  %s180_s15 = scalar_lea.hbm %s341_s0, 128 }
   0x5   : > { %p270_p2 = pnand %p146_p0, %p60_p1  ;;  %s73_s11 = sshll.u32 %s250_s10, 4  ;;  %s74_s11 = int_to_ptr.vmem [resolvable:$true] %s73_s11 }
   0x6   : > { %s347_s9 = scalar_select %p276_p3, 1, 0 }
   0x7   : > { %s346_s8 = scalar_select %p270_p2, 1, 0 }
   0x8   : > { %p162_p4 = pneg %p270_p2  ;;  %p181_p6 = scmp.ne.s32.totalorder %s341_s0, %s180_s15 }
   0x9   : > { %p187_p10 = scmp.lt.u32.totalorder %s180_s15, %s341_s0 }
   0xa   : > { %p284_p5 = pnand %p276_p3, %p162_p4 }
   0xc   : > { %p182_p7 = pneg %p284_p5 }
   0xe   : > { %p183_p8 = pnand %p182_p7, %p181_p6 }
  0x10   : > { %p184_p9 = pneg %p183_p8 }
  0x12   : > { %p189_p11 = pnand %p187_p10, %p184_p9 }
  0x14   : > { %192 = shalt.err (!%p189_p11)
}
  0x15   : > { %s193_s20 = scalar_lea.vmem %s74_s11, 128  ;;  %p201_p1 = scmp.lt.s32.totalorder %s74_s11, %s74_s11 }
  0x16   : > { %p194_p12 = scmp.ne.s32.totalorder %s74_s11, %s193_s20  ;;  %p202_p4 = scmp.lt.s32.totalorder %s193_s20, %s193_s20 }
  0x18   : > { %p196_p13 = pnand %p194_p12, %p182_p7  ;;  %p203_p3 = por %p202_p4, %p201_p1 }
  0x1a   : > { %p197_p0 = pneg %p196_p13 }
  0x1c   : > { %p204_p2 = pnand %p203_p3, %p197_p0 }
  0x1e   : > { %207 = shalt.err (!%p204_p2)
}
  0x1f   : > { %165 = dma.hbm_to_vmem [thread:$0]  (!%p284_p5), %s341_s0, 128, %s74_s11, [#allocation3]  }
  0x20   : > { %p349_p6 = scmp.ne.s32.totalorder %s346_s8, 0 }
  0x21   : > { %p350_p8 = scmp.ne.s32.totalorder (!%p349_p6), %s347_s9, 0 }
  0x22   : > { %86 = sbr.rel (%p349_p6) target bundleno = 67 (0x43), region = 24 }
  0x29   : > { %239 = dma.done.wait (%p350_p8), [#allocation3], 128  }
  0x2a   : > { %241 = vsyncadd (%p350_p8), [#allocation3], 4294967168  ;;  %s251_s23 = smov [#allocation5]   ;;  %v96_v0 = vld [vmem:[#allocation2] sm:$0xff]  ;;  %p312_p2 = scmp.eq.s32.totalorder %s145_s7, 1 }
  0x2b   : > { %s106_s24 = sshll.u32 %s251_s23, 4  ;;  %v97_v1 = vadd.f32 1.0, %v96_v0  ;;  %s107_s24 = int_to_ptr.vmem [resolvable:$true] %s106_s24 }
  0x2c   : > { %s208_s26 = scalar_lea.vmem %s107_s24, 128  ;;  %p215_p9 = scmp.lt.s32.totalorder %s107_s24, %s107_s24 }
  0x2d   : > { %98 = vst [vmem:[#allocation5] sm:$0xff] %v97_v1  ;;  %p209_p3 = scmp.ne.s32.totalorder %s107_s24, %s208_s26  ;;  %p216_p10 = scmp.lt.s32.totalorder %s208_s26, %s208_s26 }
  0x2f   : > { %p210_p5 = pnand %p209_p3, %p312_p2  ;;  %p217_p11 = por %p216_p10, %p215_p9 }
  0x31   : > { %p211_p7 = pneg %p210_p5 }
  0x33   : > { %p218_p12 = pnand %p217_p11, %p211_p7 }
  0x35   : > { %221 = shalt.err (!%p218_p12)
}
  0x36   : > { %s222_s29 = scalar_lea.hbm %s342_s1, 128 }
  0x37   : > { %p223_p13 = scmp.ne.s32.totalorder %s342_s1, %s222_s29  ;;  %p228_p4 = scmp.lt.u32.totalorder %s222_s29, %s342_s1 }
  0x39   : > { %p224_p0 = pnand %p223_p13, %p312_p2 }
  0x3b   : > { %p225_p1 = pneg %p224_p0 }
  0x3d   : > { %p230_p6 = pnand %p228_p4, %p225_p1 }
  0x3f   : > { %233 = shalt.err (!%p230_p6)
}
  0x40   : > { %159 = dma.vmem_to_hbm [thread:$0]  (%p312_p2), %s107_s24, 128, %s342_s1, [#allocation4]  }
  0x41   : > { %243 = dma.done.wait (%p312_p2), [#allocation4], 128  }
  0x42   : > { %245 = vsyncadd (%p312_p2), [#allocation4], 4294967168 }
  0x43 PF: > { %s13_s6 = sadd.s32 1, %s248_s6  }
  0x44   : > { %p10_p8 = scmp.ge.s32.totalorder %s13_s6, 4  }
  0x46   :  { %12 = sbr.rel (!%p10_p8) target bundleno = 2 (0x2), region = 53 }
  0x4d   :  { %119 = vsyncpa [#allocation3], 1 }
  0x4e   :  { %121 = vsyncpa [#allocation3 + $0x1], 1 }
  0x4f   :  { %122 = vsyncpa [#allocation4], 1 }
  0x50   :  { %124 = vsyncpa [#allocation4 + $0x1], 1 }

// kernel: tpu_custom_call.1
= control target key start
LH: loop header
LB: loop body
LE: loop exit
PB: predicated region body
PF: predicated region fallthrough
CT: control target
= control target key end

     0   :  { %s6348_s0 = inlined_call_operand.<no memory space> [shape: f32[1], index: 0, kind: input, shape index: {}]   ;;  %s6349_s1 = inlined_call_operand.vmem [shape: f32[40,128], index: 1, kind: input, shape index: {}]   ;;  %s6350_s2 = inlined_call_operand.hbm [shape: f32[128,384], index: 2, kind: input, shape index: {}]   ;;  %s6351_s3 = inlined_call_operand.vmem [shape: f32[1,384], index: 3, kind: input, shape index: {}]   ;;  %s6352_s4 = inlined_call_operand.vmem [shape: f32[128,8], index: 4, kind: input, shape index: {}]   ;;  %s6353_s5 = inlined_call_operand.vmem [shape: f32[8,256], index: 5, kind: input, shape index: {}]   ;;  %s6354_s6 = inlined_call_operand.hbm [shape: f32[40,384], index: 6, kind: output, shape index: {}]  }
   0x1   :  { %11 = sst [smem:[#allocation2]] %s6348_s0 }
   0x2   :  { %12 = vsyncpa [#allocation4], 0 }
   0x3   :  { %13 = vsyncpa [#allocation5], 0 }
   0x4   :  { %15 = vsyncpa [#allocation5 + $0x1], 0  ;;  %s4774_s23 = smov 0   ;;  %s4776_s24 = smov 0  }
   0x5   :  { %s4778_s25 = smov 0   ;;  %s4780_s26 = smov 0  }
   0x6 LB: > { %s4795_s0 = sadd.s32 4294967295, %s4727_s26   ;;  %s3282_s27 = sadd.s32 4294967294, %s4727_s26   ;;  %s4727_s26 = sphi %s4780_s26, %s6671_s26   ;;  %s4723_s25 = sphi %s4778_s25, %s6670_s25   ;;  %s4719_s24 = sphi %s4776_s24, %s6669_s24   ;;  %s4715_s23 = sphi %s4774_s23, %s6668_s23  }
   0x7   : > { %s4799_s28 = sadd.s32 1, %s4727_s26   ;;  %s159_s29 = sadd.s32 1, %s4723_s25 }
   0x8   : > { %s156_s30 = ssub.s32 %s4727_s26, %s4799_s28  ;;  %p169_p0 = scmp.ne.s32.totalorder %s4723_s25, %s4719_s24 }
   0x9   : > { %p157_p1 = scmp.eq.s32.totalorder %s156_s30, 0  ;;  %p170_p2 = scmp.eq.s32.totalorder %s4795_s0, 2 }
   0xa   : > { %p175_p3 = scmp.ne.s32.totalorder %s4719_s24, %s4715_s23  ;;  %p176_p4 = scmp.eq.s32.totalorder %s3282_s27, 2 }
   0xb   : > { %s4810_s7 = scalar_select %p157_p1, %s4723_s25, %s159_s29  }
   0xc   : > { %p4812_p5 = por %p170_p2, %p169_p0  ;;  %p4816_p6 = por %p176_p4, %p175_p3 }
   0xd   : > { %p3283_p7 = scmp.ge.s32.totalorder %s4727_s26, 1  ;;  %p183_p8 = scmp.lt.s32.totalorder %s4727_s26, 4 }
   0xe   : > { %s6476_s8 = scalar_select %p4812_p5, 1, 0 }
   0xf   : > { %s6477_s9 = scalar_select %p4816_p6, 1, 0 }
  0x10   : > { %p6355_p9 = scmp.eq.s32.totalorder %s4795_s0, 0  ;;  %p4823_p10 = pnand %p3283_p7, %p183_p8 }
  0x11   : > { %s4729_s11 = smov [#allocation3]   ;;  %s4633_s16 = scalar_lea.hbm %s6350_s2, 6144 }
  0x12   : > { %s6478_s10 = scalar_select %p4823_p10, 1, 0 }
  0x13   : > { %s198_s12 = sshll.u32 %s4729_s11, 4  ;;  %p4584_p11 = pneg %p4823_p10  ;;  %s199_s12 = int_to_ptr.vmem [resolvable:$true] %s198_s12 }
  0x14   : > { %p4634_p13 = scmp.ne.s32.totalorder %s6350_s2, %s4633_s16  ;;  %p4640_p3 = scmp.lt.u32.totalorder %s4633_s16, %s6350_s2 }
  0x15   : > { %p4831_p12 = pnand %p6355_p9, %p4584_p11 }
  0x17   : > { %p4635_p0 = pneg %p4831_p12 }
  0x19   : > { %p4636_p1 = pnand %p4635_p0, %p4634_p13 }
  0x1b   : > { %p4637_p2 = pneg %p4636_p1 }
  0x1d   : > { %p4642_p4 = pnand %p4640_p3, %p4637_p2 }
  0x1f   : > { %4645 = shalt.err (!%p4642_p4)
}
  0x20   : > { %s4646_s21 = scalar_lea.vmem %s199_s12, 6144  ;;  %p4654_p9 = scmp.lt.s32.totalorder %s199_s12, %s199_s12 }
  0x21   : > { %p4647_p7 = scmp.ne.s32.totalorder %s199_s12, %s4646_s21  ;;  %p4655_p6 = scmp.lt.s32.totalorder %s4646_s21, %s4646_s21 }
  0x23   : > { %p4649_p8 = pnand %p4647_p7, %p4635_p0  ;;  %p4656_p5 = por %p4655_p6, %p4654_p9 }
  0x25   : > { %p4650_p11 = pneg %p4649_p8 }
  0x27   : > { %p4657_p10 = pnand %p4656_p5, %p4650_p11 }
  0x29   : > { %4660 = shalt.err (!%p4657_p10)
}
  0x2a   : > { %s4730_s22 = smov 384   ;;  %s4731_s27 = smov 24  }
  0x2b   : > { %4587 = dma.hbm_to_vmem [thread:$0]  (!%p4831_p12), %s6350_s2, 6144, %s199_s12, [#allocation4], %s4730_s22, %s4730_s22, %s4731_s27  }
  0x2c   : > { %p6480_p13 = scmp.ne.s32.totalorder %s6478_s10, 0 }
  0x2e   : > { %240 = sbr.rel (%p6480_p13) target bundleno = 899 (0x383), region = 44 }
  0x35   : > { %p6481_p1 = scmp.eq.s32.totalorder %s4795_s0, 0 }
  0x37   : > { %4706 = dma.done.wait (%p6481_p1), [#allocation4], 6144   ;;  %p6482_p0 = pmov %p6481_p1 }
  0x38   : > { %v6357_v0 = vmov 0.0   ;;  %v4859_v1 = vld [vmem:[#allocation3 + $0x8] sm:$0xff]  ;;  %v4861_v2 = vld [vmem:[#allocation3 + $0x20] sm:$0xff]  ;;  %v4867_v6 = vld [vmem:[#allocation3 + $0x18] sm:$0xff]  ;;  %s5004_s10 = sshll.u32 %s4795_s0, 1  ;;  %s271_s18 = sand.u32 1, %s4719_s24  }
  0x39   : > { %4708 = vsyncadd (%p6482_p0), [#allocation4], 4294961152  ;;  %847 = vmatprep.mubr.f32.mxu0 %v6357_v0  ;;  %457 = vmatprep.mubr.f32.mxu1 %v6357_v0  ;;  %v4863_v3 = vld [vmem:[#allocation3] sm:$0xff]  ;;  %v6380_v4 = vand.u32 4294901760, %v4859_v1  ;;  %v6379_v5 = vand.u32 4294901760, %v4861_v2  ;;  %v4870_v8 = vld [vmem:[#allocation3 + $0x38] sm:$0xff] }
  0x3a   : > { %v6378_v7 = vand.u32 4294901760, %v4863_v3  ;;  %v4872_v9 = vld [vmem:[#allocation3 + $0x50] sm:$0xff]  ;;  %v6375_v10 = vand.u32 4294901760, %v4867_v6  ;;  %v6374_v11 = vand.u32 4294901760, %v4870_v8  ;;  %v4879_v14 = vld [vmem:[#allocation3 + $0x48] sm:$0xff]  ;;  %v4899_v20 = vld [vmem:[#allocation3 + $0x80] sm:$0xff] }
  0x3b   : > { %v6373_v12 = vand.u32 4294901760, %v4872_v9  ;;  %v4877_v13 = vld [vmem:[#allocation3 + $0x30] sm:$0xff]  ;;  %v4881_v15 = vld [vmem:[#allocation3 + $0x68] sm:$0xff]  ;;  %v4886_v16 = vsub.f32 %v4859_v1, %v6380_v4  ;;  %v4891_v17 = vsub.f32 %v4861_v2, %v6379_v5  ;;  %v4901_v21 = vld [vmem:[#allocation3 + $0x60] sm:$0xff]  ;;  %v6370_v25 = vand.u32 4294901760, %v4879_v14  ;;  %p279_p5 = scmp.lt.s32.totalorder %s5004_s10, 4 }
  0x3c   : > { %v4896_v18 = vsub.f32 %v4863_v3, %v6378_v7  ;;  %v6371_v19 = vand.u32 4294901760, %v4877_v13  ;;  %v4906_v22 = vsub.f32 %v4867_v6, %v6375_v10  ;;  %v4911_v23 = vsub.f32 %v4870_v8, %v6374_v11  ;;  %v4919_v26 = vld [vmem:[#allocation3 + $0x78] sm:$0xff]  ;;  %v4932_v32 = vld [vmem:[#allocation3 + $0xb0] sm:$0xff]  ;;  %v4946_v38 = vld [vmem:[#allocation3 + $0xa8] sm:$0xff]  ;;  %s4577_s21 = smul.u32 48, %s271_s18  ;;  %s6287_s13 = scalar_lea.sflag [#allocation5], %s271_s18 }
  0x3d   : > { %v4916_v24 = vsub.f32 %v4872_v9, %v6373_v12  ;;  %v4921_v27 = vld [vmem:[#allocation3 + $0x98] sm:$0xff]  ;;  %v3999_v28 = vpack.c.bf16 %v4891_v17, %v4886_v16  ;;  %v6368_v30 = vand.u32 4294901760, %v4881_v15  ;;  %v6367_v31 = vand.u32 4294901760, %v4899_v20  ;;  %v4934_v33 = vld [vmem:[#allocation3 + $0x90] sm:$0xff]  ;;  %v4960_v43 = vld [vmem:[#allocation3 + $0xc8] sm:$0xff]  ;;  %s5080_s11 = scalar_select %p279_p5, %s5004_s10, 4 }
  0x3e   : > { %v4928_v29 = vsub.f32 %v4877_v13, %v6371_v19  ;;  %v4001_v34 = vpack.c.bf16 %v4906_v22, %v4896_v18  ;;  %v4943_v36 = vsub.f32 %v4879_v14, %v6370_v25  ;;  %v6366_v37 = vand.u32 4294901760, %v4901_v21  ;;  %v4962_v44 = vld [vmem:[#allocation3 + $0xe0] sm:$0xff]  ;;  %v4975_v50 = vld [vmem:[#allocation3 + $0xd8] sm:$0xff]  ;;  %v4999_v59 = vld [vmem:[#allocation3 + $0x110] sm:$0xff]  ;;  %s6251_s22 = scalar_lea.vmem [#allocation6], %s4577_s21  ;;  %p6666_p6 = scmp.ne.s32.totalorder %s6476_s8, 0 }
  0x3f   : > { %v4003_v35 = vpack.c.bf16 %v4916_v24, %v4911_v23  ;;  %4000 = vmatprep.subr.bf16.mxu0 %v3999_v28  ;;  %v4951_v39 = vsub.f32 %v4881_v15, %v6368_v30  ;;  %v4956_v40 = vsub.f32 %v4899_v20, %v6367_v31  ;;  %v6363_v41 = vand.u32 4294901760, %v4919_v26  ;;  %v4973_v49 = vld [vmem:[#allocation3 + $0xc0] sm:$0xff]  ;;  %v4997_v58 = vld [vmem:[#allocation3 + $0xf8] sm:$0xff]  ;;  %v5022_v0 = vld [vmem:[#allocation3 + $0x108] sm:$0xff]  ;;  %s3289_s12 = sshll.u32 %s5080_s11, 3  ;;  %s3195_s14 = ssub.s32 (%p6666_p6), 5, %s5004_s10 }
  0x40   : > { %v6362_v42 = vand.u32 4294901760, %v4921_v27  ;;  %4002 = vmatpush1.bf16.msra.mxu0 %v4001_v34  ;;  %v4005_v45 = vpack.c.bf16 %v4943_v36, %v4928_v29  ;;  %v4969_v46 = vsub.f32 %v4901_v21, %v6366_v37  ;;  %v6360_v47 = vand.u32 4294901760, %v4932_v32  ;;  %v5057_v25 = vld [vmem:[#allocation3 + $0x120] sm:$0xff]  ;;  %v5071_v12 = vld [vmem:[#allocation3 + $0x138] sm:$0xff]  ;;  %v5075_v10 = vld [vmem:[#allocation3 + $0x170] sm:$0xff]  ;;  %s282_s15 = scalar_lea.vmem %s6349_s1, %s3289_s12  ;;  %s2649_s12 = sld [smem:[#allocation2]] }
  0x41   : > { %v6359_v48 = vand.u32 4294901760, %v4934_v33  ;;  %4004 = vmatprep.subr.bf16.mxu0 %v4003_v35  ;;  %v4007_v51 = vpack.c.bf16 %v4956_v40, %v4951_v39  ;;  %v4982_v52 = vsub.f32 %v4919_v26, %v6363_v41  ;;  %v6361_v54 = vand.u32 4294901760, %v4946_v38  ;;  %v5020_v35 = vld [vmem:[#allocation3 + $0xf0] sm:$0xff]  ;;  %v5038_v41 = vld [vmem:[#allocation3 + $0x140] sm:$0xff]  ;;  %v5073_v11 = vld [vmem:[#allocation3 + $0x158] sm:$0xff]  ;;  %p3196_p9 = scmp.lt.s32.totalorder (%p6666_p6), %s3195_s14, 2 }
  0x42   : > { %v4987_v53 = vsub.f32 %v4921_v27, %v6362_v42  ;;  %v4993_v55 = vsub.f32 %v4932_v32, %v6360_v47  ;;  %v6365_v56 = vand.u32 4294901760, %v4960_v43  ;;  %v6364_v57 = vand.u32 4294901760, %v4962_v44  ;;  %v5036_v42 = vld [vmem:[#allocation3 + $0x128] sm:$0xff] }
  0x43   : > { %v6369_v60 = vand.u32 4294901760, %v4973_v49  ;;  %v6372_v61 = vand.u32 4294901760, %v4975_v50  ;;  %v4009_v62 = vpack.c.bf16 %v4982_v52, %v4969_v46  ;;  %v5013_v28 = vsub.f32 %v4934_v33, %v6359_v48 }
  0x44   : > { %4006 = vmatpush1.bf16.msra.mxu0 %v4005_v45  ;;  %v4011_v63 = vpack.c.bf16 %v4993_v55, %v4987_v53  ;;  %v5018_v34 = vsub.f32 %v4946_v38, %v6361_v54  ;;  %v5027_v45 = vsub.f32 %v4960_v43, %v6365_v56  ;;  %v5032_v48 = vsub.f32 %v4962_v44, %v6364_v57 }
  0x45   : > { %4008 = vmatprep.subr.bf16.mxu0 %v4007_v51  ;;  %v6376_v47 = vand.u32 4294901760, %v4997_v58  ;;  %v6377_v54 = vand.u32 4294901760, %v4999_v59  ;;  %v5044_v51 = vsub.f32 %v4973_v49, %v6369_v60  ;;  %v5049_v57 = vsub.f32 %v4975_v50, %v6372_v61 }
  0x46   : > { %6483 = vst [vmem:[#allocation9_spill] sm:$0xff] %v5027_v45  ;;  %6484 = vst [vmem:[#allocation10_spill] sm:$0xff] %v5032_v48  ;;  %v6381_v56 = vand.u32 4294901760, %v5020_v35  ;;  %v6384_v37 = vand.u32 4294901760, %v5022_v0  ;;  %v4013_v31 = vpack.c.bf16 %v5018_v34, %v5013_v28  ;;  %v6387_v30 = vand.u32 4294901760, %v5036_v42 }
  0x47   : > { %6485 = vst [vmem:[#allocation11_spill] sm:$0xff] %v5044_v51  ;;  %6486 = vst [vmem:[#allocation12_spill] sm:$0xff] %v5049_v57  ;;  %v6390_v60 = vand.u32 4294901760, %v5038_v41  ;;  %v4015_v19 = vpack.c.bf16 %v5032_v48, %v5027_v45  ;;  %v5064_v61 = vsub.f32 %v4997_v58, %v6376_v47  ;;  %v5116_v48 = vld [vmem:[#allocation3 + $0x150] sm:$0xff]  ;;  %v6495_v7 = vand.u32 4294901760, %v4872_v9 }
  0x48   : > { %4010 = vmatpush1.bf16.msra.mxu0 %v4009_v62  ;;  %v5069_v62 = vsub.f32 %v4999_v59, %v6377_v54  ;;  %v5087_v47 = vsub.f32 %v5020_v35, %v6381_v56  ;;  %v5092_v54 = vsub.f32 %v5022_v0, %v6384_v37  ;;  %v5098_v5 = vsub.f32 %v5036_v42, %v6387_v30 }
  0x49   : > { %4012 = vmatprep.subr.bf16.mxu0 %v4011_v63  ;;  %v4017_v63 = vpack.c.bf16 %v5049_v57, %v5044_v51  ;;  %v5103_v4 = vsub.f32 %v5038_v41, %v6390_v60  ;;  %v6487_v57 = vand.u32 4294901760, %v4859_v1  ;;  %v6488_v37 = vand.u32 4294901760, %v4861_v2  ;;  %v5118_v60 = vld [vmem:[#allocation3 + $0x168] sm:$0xff] }
  0x4a   : > { %v6489_v56 = vand.u32 4294901760, %v4863_v3  ;;  %v6490_v1 = vand.u32 4294901760, %v4867_v6  ;;  %v4021_v2 = vpack.c.bf16 %v5092_v54, %v5087_v47  ;;  %v6500_v9 = vand.u32 4294901760, %v5075_v10 }
  0x4b   : > { %v5110_v51 = vpack.c.bf16 %v6488_v37, %v6487_v57  ;;  %v6494_v57 = vand.u32 4294901760, %v4870_v8  ;;  %v4023_v6 = vpack.c.bf16 %v5103_v4, %v5098_v5  ;;  %v6499_v8 = vand.u32 4294901760, %v5073_v11 }
  0x4c   : > { %4014 = vmatpush1.bf16.msra.mxu0 %v4013_v31  ;;  %v4019_v31 = vpack.c.bf16 %v5069_v62, %v5064_v61  ;;  %v5124_v45 = vpack.c.bf16 %v6490_v1, %v6489_v56  ;;  %v6497_v56 = vand.u32 4294901760, %v5071_v12  ;;  %vm2655_vm0 = vcmask 64512  }
  0x4d   : > { %4016 = vmatprep.subr.bf16.mxu0 %v4015_v19  ;;  %3936 = vmatprep.subr.bf16.mxu1 %v5110_v51  ;;  %v6492_v19 = vand.u32 4294901760, %v5057_v25  ;;  %v5139_v3 = vpack.c.bf16 %v6495_v7, %v6494_v57  ;;  %v5154_v7 = vsub.f32 %v5073_v11, %v6499_v8  ;;  %v6502_v57 = vand.u32 4294901760, %v4877_v13 }
  0x4e   : > { %6491 = vst [vmem:[#allocation13_spill] sm:$0xff] %v5124_v45  ;;  %3938 = vmatpush1.bf16.msra.mxu1 %v5124_v45  ;;  %v5147_v1 = vsub.f32 %v5071_v12, %v6497_v56  ;;  %v6503_v56 = vand.u32 4294901760, %v4879_v14  ;;  %v6506_v8 = vand.u32 4294901760, %v4899_v20  ;;  %v6508_v13 = vand.u32 4294901760, %v5116_v48 }
  0x4f   : > { %v5133_v37 = vsub.f32 %v5057_v25, %v6492_v19  ;;  %6496 = vst [vmem:[#allocation15_spill] sm:$0xff] %v5139_v3  ;;  %3940 = vmatprep.subr.bf16.mxu1 %v5139_v3 }
  0x50   : > { %4018 = vmatpush1.bf16.msra.mxu0 %v4017_v63  ;;  %6498 = vst [vmem:[#allocation16_spill] sm:$0xff] %v5147_v1  ;;  %v5159_v63 = vsub.f32 %v5075_v10, %v6500_v9  ;;  %v5168_v30 = vpack.c.bf16 %v6503_v56, %v6502_v57  ;;  %v5183_v14 = vsub.f32 %v5116_v48, %v6508_v13  ;;  %v6509_v57 = vand.u32 4294901760, %v5118_v60 }
  0x51   : > { %6493 = vst [vmem:[#allocation14_spill] sm:$0xff] %v5133_v37  ;;  %4020 = vmatprep.subr.bf16.mxu0 %v4019_v31  ;;  %v6505_v31 = vand.u32 4294901760, %v4881_v15  ;;  %v4025_v9 = vpack.c.bf16 %v5147_v1, %v5133_v37  ;;  %v294_v15 = vld [vmem:[%s282_s15] sm:$0xff]  ;;  %v6513_v13 = vand.u32 4294901760, %v4921_v27  ;;  %v6514_v1 = vand.u32 4294901760, %v4932_v32 }
  0x52   : > { %6501 = vst [vmem:[#allocation17_spill] sm:$0xff] %v5159_v63  ;;  %6504 = vst [vmem:[#allocation18_spill] sm:$0xff] %v5168_v30  ;;  %3942 = vmatpush1.bf16.msra.mxu1 %v5168_v30  ;;  %v5188_v56 = vsub.f32 %v5118_v60, %v6509_v57  ;;  %v4027_v20 = vpack.c.bf16 %v5159_v63, %v5154_v7  ;;  %v5205_v57 = vand.u32 4294901760, %v294_v15  ;;  %v295_v63 = vld [vmem:[%s282_s15 + $0x8] sm:$0xff]  ;;  %v6518_v32 = vand.u32 4294901760, %v4960_v43 }
  0x53   : > { %v5175_v19 = vpack.c.bf16 %v6506_v8, %v6505_v31  ;;  %v6511_v31 = vand.u32 4294901760, %v4919_v26  ;;  %v5203_v37 = vpack.c.bf16 %v6514_v1, %v6513_v13  ;;  %v6516_v26 = vand.u32 4294901760, %v4946_v38 }
  0x54   : > { %4022 = vmatpush1.bf16.msra.mxu0 %v4021_v2  ;;  %v6510_v2 = vand.u32 4294901760, %v4901_v21  ;;  %v6515_v21 = vand.u32 4294901760, %v4934_v33  ;;  %v6519_v1 = vand.u32 4294901760, %v4962_v44  ;;  %v6522_v33 = vand.u32 4294901760, %v4973_v49 }
  0x55   : > { %6507 = vst [vmem:[#allocation19_spill] sm:$0xff] %v5175_v19  ;;  %3944 = vmatprep.subr.bf16.mxu1 %v5175_v19  ;;  %4024 = vmatprep.subr.bf16.mxu0 %v4023_v6  ;;  %v4029_v6 = vpack.c.bf16 %v5188_v56, %v5183_v14  ;;  %v6523_v38 = vand.u32 4294901760, %v4975_v50  ;;  %v6400_v44 = vand.u32 4294901760, %v4886_v16  ;;  %v6526_v13 = vand.u32 4294901760, %v4999_v59 }
  0x56   : > { %v5197_v8 = vpack.c.bf16 %v6511_v31, %v6510_v2  ;;  %v5215_v27 = vpack.c.bf16 %v6516_v26, %v6515_v21  ;;  %v5221_v2 = vpack.c.bf16 %v6519_v1, %v6518_v32  ;;  %v5226_v31 = vand.u32 4294901760, %v295_v63 }
  0x57   : > { %v5235_v43 = vpack.c.bf16 %v6523_v38, %v6522_v33  ;;  %v6529_v49 = vmov 0.0   ;;  %v483_v50 = vsub.f32 %v4886_v16, %v6400_v44  ;;  %v6530_v59 = vand.u32 4294901760, %v5020_v35 }
  0x58   : > { %6512 = vst [vmem:[#allocation20_spill] sm:$0xff] %v5197_v8  ;;  %3946 = vmatpush1.bf16.msra.mxu1 %v5197_v8  ;;  %4026 = vmatpush1.bf16.msra.mxu0 %v4025_v9  ;;  %6517 = vst [vmem:[#allocation21_spill] sm:$0xff] %v5215_v27  ;;  %v5224_v9 = vsub.f32 %v294_v15, %v5205_v57  ;;  %v6399_v15 = vand.u32 4294901760, %v4891_v17  ;;  %v5247_v21 = vsub.f32 %v295_v63, %v5226_v31 }
  0x59   : > { %3948 = vmatprep.subr.bf16.mxu1 %v5203_v37  ;;  %4028 = vmatprep.subr.bf16.mxu0 %v4027_v20  ;;  %6520 = vst [vmem:[#allocation22_spill] sm:$0xff] %v5221_v2  ;;  %6524 = vst [vmem:[#allocation24_spill] sm:$0xff] %v5235_v43  ;;  %v6525_v20 = vand.u32 4294901760, %v4997_v58  ;;  %v6531_v63 = vand.u32 4294901760, %v5022_v0  ;;  %v6401_v32 = vand.u32 4294901760, %v4896_v18  ;;  %v6402_v1 = vand.u32 4294901760, %v4906_v22 }
  0x5a   : > { %6521 = vst [vmem:[#allocation23_spill] sm:$0xff] %v5224_v9  ;;  %6528 = vst [vmem:[#allocation26_spill] sm:$0xff] %v5247_v21  ;;  %v495_v58 = vsub.f32 %v4891_v17, %v6399_v15  ;;  %v6533_v33 = vand.u32 4294901760, %v5036_v42  ;;  %v6534_v38 = vand.u32 4294901760, %v5038_v41  ;;  %v6403_v35 = vand.u32 4294901760, %v4911_v23 }
  0x5b   : > { %v5263_v26 = vpack.c.bf16 %v6531_v63, %v6530_v59  ;;  %v6404_v0 = vand.u32 4294901760, %v4916_v24  ;;  %v489_v41 = vsub.f32 %v4896_v18, %v6401_v32  ;;  %v501_v42 = vsub.f32 %v4906_v22, %v6402_v1 }
  0x5c   : > { %3950 = vmatpush1.bf16.msra.mxu1 %v5215_v27  ;;  %4030 = vmatpush1.bf16.msra.mxu0 %v4029_v6  ;;  %v5244_v6 = vpack.c.bf16 %v6526_v13, %v6525_v20  ;;  %v5272_v20 = vpack.c.bf16 %v6534_v38, %v6533_v33  ;;  %v5275_v13 = vand.u32 4294901760, %v5224_v9  ;;  %v484_v33 = vand.u32 4294901760, %v483_v50 }
  0x5d   : > { %3952 = vmatprep.subr.bf16.mxu1 %v5221_v2  ;;  %4032 = vmatprep.subr.bf16.mxu0 %v5110_v51  ;;  %6532 = vst [vmem:[#allocation27_spill] sm:$0xff] %v5263_v26  ;;  %v496_v38 = vand.u32 4294901760, %v495_v58  ;;  %v507_v15 = vsub.f32 %v4911_v23, %v6403_v35  ;;  %v519_v44 = vsub.f32 %v4916_v24, %v6404_v0  ;;  %v6536_v32 = vand.u32 4294901760, %v5057_v25 }
  0x5e   : > { %6527 = vst [vmem:[#allocation25_spill] sm:$0xff] %v5244_v6  ;;  %6535 = vst [vmem:[#allocation28_spill] sm:$0xff] %v5272_v20  ;;  %v6537_v1 = vand.u32 4294901760, %v5071_v12  ;;  %v461_v58 = vsub.f32 %v5224_v9, %v5275_v13  ;;  %v6538_v35 = vand.u32 4294901760, %v5073_v11  ;;  %v6539_v0 = vand.u32 4294901760, %v5075_v10 }
  0x5f   : > { %850 = vmatmul.mubr.f32.vlgmr.msra.gmra.mrb[0].mxu0 %v5224_v9  ;;  %v6540_v12 = vand.u32 4294901760, %v4928_v29  ;;  %v490_v59 = vand.u32 4294901760, %v489_v41  ;;  %v502_v9 = vand.u32 4294901760, %v501_v42  ;;  %v6542_v11 = vand.u32 4294901760, %v4951_v39 }
  0x60   : > { %3954 = vmatpush1.bf16.msra.mxu1 %v5235_v43  ;;  %4034 = vmatpush1.bf16.msra.mxu0 %v5124_v45  ;;  %v5302_v63 = vpack.c.bf16 %v6537_v1, %v6536_v32  ;;  %v6541_v1 = vand.u32 4294901760, %v4943_v36  ;;  %v3967_v25 = vpack.c.bf16 %v496_v38, %v484_v33  ;;  %v6544_v41 = vand.u32 4294901760, %v5116_v48 }
  0x61   : > { %855 = vmatprep.mubr.f32.mxu0 %v6529_v49  ;;  %4036 = vmatprep.subr.bf16.mxu0 %v5139_v3  ;;  %v513_v32 = vsub.f32 %v4928_v29, %v6540_v12  ;;  %v531_v10 = vsub.f32 %v4951_v39, %v6542_v11  ;;  %v6545_v42 = vand.u32 4294901760, %v5118_v60  ;;  %v6413_v3 = vand.u32 4294901760, %v4987_v53 }
  0x62   : > { %3956 = vmatprep.subr.bf16.mxu1 %v5244_v6  ;;  %v525_v50 = vsub.f32 %v4943_v36, %v6541_v1  ;;  %v508_v1 = vand.u32 4294901760, %v507_v15  ;;  %v6546_v33 = vand.u32 4294901760, %v4969_v46  ;;  %v6547_v15 = vand.u32 4294901760, %v4982_v52 }
  0x63   : > { %858 = vmatmul.mubr.f32.gmra.mrb[2].mxu0 %v5247_v21  ;;  %v5337_v11 = vpack.c.bf16 %v6545_v42, %v6544_v41  ;;  %v514_v12 = vand.u32 4294901760, %v513_v32  ;;  %v3969_v60 = vpack.c.bf16 %v502_v9, %v490_v59  ;;  %v532_v38 = vand.u32 4294901760, %v531_v10  ;;  %v6548_v59 = vld [vmem:[#allocation9_spill] sm:$0xff] }
  0x64   : > { %3958 = vmatpush1.bf16.msra.mxu1 %v5263_v26  ;;  %4038 = vmatpush1.bf16.msra.mxu0 %v5168_v30  ;;  %v520_v30 = vand.u32 4294901760, %v519_v44  ;;  %v526_v45 = vand.u32 4294901760, %v525_v50  ;;  %v537_v44 = vsub.f32 %v4969_v46, %v6546_v33  ;;  %v549_v48 = vsub.f32 %v4982_v52, %v6547_v15 }
  0x65   : > { %960 = vmatprep.mubr.f32.mxu0 %v6529_v49  ;;  %4040 = vmatprep.subr.bf16.mxu0 %v5175_v19  ;;  %v5313_v19 = vpack.c.bf16 %v6539_v0, %v6538_v35  ;;  %v6543_v35 = vand.u32 4294901760, %v4956_v40  ;;  %v6416_v42 = vand.u32 4294901760, %v5013_v28  ;;  %v6415_v9 = vand.u32 4294901760, %v5018_v34 }
  0x66   : > { %3960 = vmatprep.subr.bf16.mxu1 %v5272_v20  ;;  %v3971_v50 = vpack.c.bf16 %v520_v30, %v508_v1  ;;  %v5363_v15 = vand.u32 4294901760, %v5247_v21  ;;  %v3973_v30 = vpack.c.bf16 %v526_v45, %v514_v12  ;;  %v550_v1 = vand.u32 4294901760, %v549_v48 }
  0x67   : > { %v543_v0 = vsub.f32 %v4956_v40, %v6543_v35  ;;  %v6412_v35 = vand.u32 4294901760, %v4993_v55  ;;  %v573_v10 = vsub.f32 %v5018_v34, %v6415_v9  ;;  %v6550_v45 = vand.u32 4294901760, %v6548_v59 }
  0x68   : > { %3962 = vmatpush1.bf16.msra.mxu1 %v5302_v63  ;;  %4042 = vmatpush1.bf16.msra.mxu0 %v5197_v8  ;;  %v5341_v8 = vand.u32 4294901760, %v461_v58  ;;  %v555_v58 = vsub.f32 %v4987_v53, %v6413_v3 }
  0x69   : > { %3964 = vmatprep.subr.bf16.mxu1 %v5313_v19  ;;  %4044 = vmatprep.subr.bf16.mxu0 %v5203_v37  ;;  %v544_v41 = vand.u32 4294901760, %v543_v0  ;;  %v567_v32 = vsub.f32 %v4993_v55, %v6412_v35  ;;  %v6549_v0 = vld [vmem:[#allocation10_spill] sm:$0xff]  ;;  %v579_v12 = vsub.f32 %v6548_v59, %v6550_v45 }
  0x6a   : > { %v556_v3 = vand.u32 4294901760, %v555_v58  ;;  %v6553_v58 = vld [vmem:[#allocation12_spill] sm:$0xff] }
  0x6b   : > { %v3975_v35 = vpack.c.bf16 %v544_v41, %v532_v38  ;;  %v568_v33 = vand.u32 4294901760, %v567_v32  ;;  %v6552_v38 = vld [vmem:[#allocation11_spill] sm:$0xff]  ;;  %v6422_v9 = vand.u32 4294901760, %v6553_v58  ;;  %v6429_v32 = vand.u32 4294901760, %v5092_v54 }
  0x6c   : > { %3966 = vmatpush1.bf16.msra.mxu1 %v5337_v11  ;;  %4046 = vmatpush1.bf16.msra.mxu0 %v5215_v27  ;;  %v6424_v41 = vand.u32 4294901760, %v6552_v38  ;;  %v574_v27 = vand.u32 4294901760, %v573_v10  ;;  %v6555_v10 = vand.u32 4294901760, %v5069_v62 }
  0x6d   : > { %3968 = vmatprep.subr.bf16.mxu1 %v3967_v25  ;;  %4048 = vmatprep.subr.bf16.mxu0 %v5221_v2  ;;  %v538_v25 = vand.u32 4294901760, %v537_v44  ;;  %v561_v2 = vsub.f32 %v5013_v28, %v6416_v42  ;;  %v6551_v44 = vand.u32 4294901760, %v6549_v0  ;;  %v3979_v42 = vpack.c.bf16 %v568_v33, %v556_v3 }
  0x6f   : > { %463 = vmatmul.mubr.f32.vlgmr.msra.gmra.mrb[0].mxu1 %v5341_v8  ;;  %v591_v48 = vsub.f32 %v6549_v0, %v6551_v44  ;;  %v3977_v45 = vpack.c.bf16 %v550_v1, %v538_v25  ;;  %v562_v44 = vand.u32 4294901760, %v561_v2  ;;  %v580_v25 = vand.u32 4294901760, %v579_v12 }
  0x70   : > { %3970 = vmatpush1.bf16.msra.mxu1 %v3969_v60  ;;  %468 = vmatprep.mubr.f32.mxu1 %v6529_v49  ;;  %v472_v60 = vsub.f32 %v5247_v21, %v5363_v15  ;;  %v585_v21 = vsub.f32 %v6552_v38, %v6424_v41  ;;  %v6558_v41 = vand.u32 4294901760, %v4891_v17  ;;  %v650_v17 = vand.u32 4294901760, %v5154_v7 }
  0x71   : > { %4050 = vmatpush1.bf16.msra.mxu0 %v5235_v43  ;;  %3972 = vmatprep.subr.bf16.mxu1 %v3971_v50  ;;  %v6423_v50 = vand.u32 4294901760, %v5064_v61  ;;  %v592_v1 = vand.u32 4294901760, %v591_v48  ;;  %v3981_v12 = vpack.c.bf16 %v574_v27, %v562_v44  ;;  %v6561_v27 = vand.u32 4294901760, %v5098_v5 }
  0x72   : > { %4052 = vmatprep.subr.bf16.mxu0 %v5244_v6  ;;  %v5388_v43 = vand.u32 4294901760, %v472_v60  ;;  %v597_v6 = vsub.f32 %v6553_v58, %v6422_v9  ;;  %v6556_v9 = vand.u32 4294901760, %v5087_v47  ;;  %v586_v48 = vand.u32 4294901760, %v585_v21 }
  0x73   : > { %v603_v2 = vsub.f32 %v5064_v61, %v6423_v50  ;;  %v6557_v50 = vand.u32 4294901760, %v4886_v16  ;;  %v6562_v21 = vand.u32 4294901760, %v5103_v4 }
  0x74   : > { %6554 = vst [vmem:[#allocation9_spill] sm:$0xff] %v5388_v43  ;;  %3974 = vmatpush1.bf16.msra.mxu1 %v3973_v30  ;;  %v615_v30 = vsub.f32 %v5069_v62, %v6555_v10  ;;  %v609_v3 = vsub.f32 %v5087_v47, %v6556_v9  ;;  %v598_v10 = vand.u32 4294901760, %v597_v6  ;;  %v6559_v9 = vld [vmem:[#allocation14_spill] sm:$0xff]  ;;  %v627_v6 = vsub.f32 %v5098_v5, %v6561_v27 }
  0x75   : > { %4054 = vmatpush1.bf16.msra.mxu0 %v5263_v26  ;;  %3976 = vmatprep.subr.bf16.mxu1 %v3975_v35  ;;  %v621_v35 = vsub.f32 %v5092_v54, %v6429_v32  ;;  %v4063_v60 = vpack.c.bf16 %v6558_v41, %v6557_v50  ;;  %v6560_v26 = vld [vmem:[#allocation16_spill] sm:$0xff]  ;;  %v3983_v32 = vpack.c.bf16 %v592_v1, %v580_v25  ;;  %v604_v33 = vand.u32 4294901760, %v603_v2  ;;  %v6563_v41 = vld [vmem:[#allocation17_spill] sm:$0xff] }
  0x76   : > { %4056 = vmatprep.subr.bf16.mxu0 %v5272_v20  ;;  %474 = vmatmul.mubr.f32.gmra.mrb[2].mxu1 %v5388_v43  ;;  %v632_v20 = vand.u32 4294901760, %v6559_v9  ;;  %v639_v16 = vsub.f32 %v5103_v4, %v6562_v21  ;;  %v662_v50 = vand.u32 4294901760, %v6563_v41  ;;  %v610_v44 = vand.u32 4294901760, %v609_v3 }
  0x77   : > { %704 = vmatprep.mubr.f32.mxu1 %v6529_v49  ;;  %v622_v43 = vand.u32 4294901760, %v621_v35  ;;  %v6565_v25 = vand.u32 4294901760, %v4906_v22  ;;  %v3985_v2 = vpack.c.bf16 %v598_v10, %v586_v48  ;;  %v6566_v27 = vand.u32 4294901760, %v6560_v26 }
  0x78   : > { %3978 = vmatpush1.bf16.msra.mxu1 %v3977_v45  ;;  %v616_v45 = vand.u32 4294901760, %v615_v30  ;;  %v633_v30 = vsub.f32 %v6559_v9, %v632_v20  ;;  %v6567_v3 = vand.u32 4294901760, %v4911_v23  ;;  %v6568_v35 = vand.u32 4294901760, %v4916_v24 }
  0x79   : > { %4058 = vmatpush1.bf16.msra.mxu0 %v5302_v63  ;;  %3980 = vmatprep.subr.bf16.mxu1 %v3979_v42  ;;  %v6564_v42 = vand.u32 4294901760, %v4896_v18  ;;  %v645_v21 = vsub.f32 %v6560_v26, %v6566_v27  ;;  %v656_v22 = vand.u32 4294901760, %v5183_v14  ;;  %v663_v48 = vsub.f32 %v6563_v41, %v662_v50 }
  0x7a   : > { %4060 = vmatprep.subr.bf16.mxu0 %v5313_v19  ;;  %v4067_v18 = vpack.c.bf16 %v6568_v35, %v6567_v3  ;;  %v668_v10 = vand.u32 4294901760, %v5188_v56  ;;  %v640_v23 = vand.u32 4294901760, %v639_v16  ;;  %v3989_v27 = vpack.c.bf16 %v622_v43, %v610_v44 }
  0x7b   : > { %v4065_v1 = vpack.c.bf16 %v6565_v25, %v6564_v42  ;;  %v3987_v42 = vpack.c.bf16 %v616_v45, %v604_v33  ;;  %v628_v25 = vand.u32 4294901760, %v627_v6  ;;  %v634_v24 = vand.u32 4294901760, %v633_v30 }
  0x7c   : > { %3982 = vmatpush1.bf16.msra.mxu1 %v3981_v12  ;;  %v651_v12 = vsub.f32 %v5154_v7, %v650_v17  ;;  %v657_v3 = vsub.f32 %v5183_v14, %v656_v22  ;;  %v669_v35 = vsub.f32 %v5188_v56, %v668_v10  ;;  %v6570_v33 = vand.u32 4294901760, %v4943_v36 }
  0x7d   : > { %4062 = vmatpush1.bf16.msra.mxu0 %v5337_v11  ;;  %3984 = vmatprep.subr.bf16.mxu1 %v3983_v32  ;;  %v646_v32 = vand.u32 4294901760, %v645_v21  ;;  %v664_v6 = vand.u32 4294901760, %v663_v48  ;;  %v6571_v16 = vand.u32 4294901760, %v4951_v39  ;;  %v6572_v44 = vand.u32 4294901760, %v4956_v40 }
  0x7e   : > { %4064 = vmatprep.subr.bf16.mxu0 %v4063_v60  ;;  %v6569_v60 = vand.u32 4294901760, %v4928_v29  ;;  %v652_v43 = vand.u32 4294901760, %v651_v12  ;;  %v3991_v30 = vpack.c.bf16 %v640_v23, %v628_v25  ;;  %v658_v29 = vand.u32 4294901760, %v657_v3  ;;  %v298_v25 = vld [vmem:[#allocation3 + $0x10] sm:$0xff] }
  0x7f   : > { %v670_v21 = vand.u32 4294901760, %v669_v35  ;;  %v6573_v36 = vand.u32 4294901760, %v4969_v46  ;;  %v6574_v12 = vand.u32 4294901760, %v4982_v52  ;;  %v6575_v40 = vand.u32 4294901760, %v4987_v53  ;;  %v304_v35 = vld [vmem:[#allocation3 + $0x40] sm:$0xff] }
  0x80   : > { %964 = vmatmul.mubr.f32.vlgmr.msra.gmra.mrb[0].mxu0 %v5275_v13  ;;  %3986 = vmatpush1.bf16.msra.mxu1 %v3985_v2  ;;  %v4069_v45 = vpack.c.bf16 %v6570_v33, %v6569_v60  ;;  %v4071_v2 = vpack.c.bf16 %v6572_v44, %v6571_v16  ;;  %v3995_v39 = vpack.c.bf16 %v664_v6, %v652_v43  ;;  %v6577_v46 = vand.u32 4294901760, %v5013_v28  ;;  %v307_v60 = vld [vmem:[#allocation3 + $0x58] sm:$0xff]  ;;  %v5490_v43 = vld [vmem:[#allocation3 + $0x88] sm:$0xff] }
  0x81   : > { %4066 = vmatpush1.bf16.msra.mxu0 %v4065_v1  ;;  %969 = vmatprep.mubr.f32.mxu0 %v6529_v49  ;;  %v3993_v1 = vpack.c.bf16 %v646_v32, %v634_v24  ;;  %v4073_v48 = vpack.c.bf16 %v6574_v12, %v6573_v36  ;;  %v3997_v23 = vpack.c.bf16 %v670_v21, %v658_v29  ;;  %v6578_v52 = vand.u32 4294901760, %v5018_v34  ;;  %v5504_v21 = vld [vmem:[#allocation3 + $0xa0] sm:$0xff] }
  0x82   : > { %4068 = vmatprep.subr.bf16.mxu0 %v4067_v18  ;;  %3988 = vmatprep.subr.bf16.mxu1 %v3987_v42  ;;  %v6576_v18 = vand.u32 4294901760, %v4993_v55  ;;  %v6579_v32 = vand.u32 4294901760, %v6548_v59  ;;  %v6580_v53 = vand.u32 4294901760, %v6549_v0  ;;  %v1266_v55 = vand.u32 4294901760, %v298_v25 }
  0x83   : > { %v4077_v24 = vpack.c.bf16 %v6578_v52, %v6577_v46  ;;  %v6581_v28 = vand.u32 4294901760, %v6552_v38  ;;  %v6582_v34 = vand.u32 4294901760, %v6553_v58  ;;  %v1272_v59 = vand.u32 4294901760, %v304_v35  ;;  %v5506_v38 = vld [vmem:[#allocation3 + $0xb8] sm:$0xff] }
  0x84   : > { %973 = vmatmul.mubr.f32.gmra.mrb[2].mxu0 %v5363_v15  ;;  %3990 = vmatpush1.bf16.msra.mxu1 %v3989_v27  ;;  %v4075_v42 = vpack.c.bf16 %v6576_v18, %v6575_v40  ;;  %v301_v27 = vld [vmem:[#allocation3 + $0x28] sm:$0xff]  ;;  %v4079_v3 = vpack.c.bf16 %v6580_v53, %v6579_v32  ;;  %v1275_v0 = vand.u32 4294901760, %v307_v60  ;;  %v6583_v44 = vand.u32 4294901760, %v5064_v61 }
  0x85   : > { %4070 = vmatpush1.bf16.msra.mxu0 %v4069_v45  ;;  %1139 = vmatprep.mubr.f32.mxu0 %v6529_v49  ;;  %v1269_v33 = vand.u32 4294901760, %v301_v27  ;;  %v5488_v45 = vld [vmem:[#allocation3 + $0x70] sm:$0xff]  ;;  %v4081_v6 = vpack.c.bf16 %v6582_v34, %v6581_v28  ;;  %v1281_v29 = vand.u32 4294901760, %v5490_v43  ;;  %v6585_v61 = vand.u32 4294901760, %v5087_v47 }
  0x86   : > { %4072 = vmatprep.subr.bf16.mxu0 %v4071_v2  ;;  %3992 = vmatprep.subr.bf16.mxu1 %v3991_v30  ;;  %v6584_v2 = vand.u32 4294901760, %v5069_v62  ;;  %v5510_v58 = vpack.c.bf16 %v1275_v0, %v1272_v59  ;;  %v6586_v62 = vand.u32 4294901760, %v5092_v54  ;;  %v6587_v40 = vand.u32 4294901760, %v5098_v5  ;;  %v5531_v54 = vld [vmem:[#allocation3 + $0xd0] sm:$0xff] }
  0x87   : > { %v5496_v16 = vpack.c.bf16 %v1269_v33, %v1266_v55  ;;  %v6588_v47 = vand.u32 4294901760, %v5103_v4  ;;  %v1290_v5 = vand.u32 4294901760, %v5531_v54  ;;  %v4091_v9 = vpack.c.bf16 %v662_v50, %v650_v17  ;;  %v5577_v50 = vld [vmem:[#allocation3 + $0x130] sm:$0xff] }
  0x88   : > { %3994 = vmatpush1.bf16.msra.mxu1 %v3993_v1  ;;  %v4083_v30 = vpack.c.bf16 %v6584_v2, %v6583_v44  ;;  %v1278_v1 = vand.u32 4294901760, %v5488_v45  ;;  %v4085_v36 = vpack.c.bf16 %v6586_v62, %v6585_v61  ;;  %v5561_v32 = vsub.f32 %v301_v27, %v1269_v33  ;;  %v5600_v33 = vld [vmem:[#allocation3 + $0x178] sm:$0xff] }
  0x89   : > { %4074 = vmatpush1.bf16.msra.mxu0 %v4073_v48  ;;  %3996 = vmatprep.subr.bf16.mxu1 %v3995_v39  ;;  %v1284_v48 = vand.u32 4294901760, %v5504_v21  ;;  %v1287_v39 = vand.u32 4294901760, %v5506_v38  ;;  %v4087_v18 = vpack.c.bf16 %v6588_v47, %v6587_v40  ;;  %v4093_v53 = vpack.c.bf16 %v668_v10, %v656_v22  ;;  %v6593_v47 = vld [vmem:[#allocation18_spill] sm:$0xff] }
  0x8a   : > { %4076 = vmatprep.subr.bf16.mxu0 %v4075_v42  ;;  %v5523_v12 = vpack.c.bf16 %v1281_v29, %v1278_v1  ;;  %v5533_v42 = vld [vmem:[#allocation3 + $0xe8] sm:$0xff]  ;;  %v6444_v56 = vand.u32 4294901760, %v5561_v32  ;;  %v5583_v22 = vsub.f32 %v304_v35, %v1272_v59  ;;  %v5586_v10 = vsub.f32 %v307_v60, %v1275_v0  ;;  %v5598_v35 = vld [vmem:[#allocation3 + $0x160] sm:$0xff] }
  0x8b   : > { %v5547_v4 = vpack.c.bf16 %v1287_v39, %v1284_v48  ;;  %v1293_v52 = vand.u32 4294901760, %v5533_v42  ;;  %v6590_v59 = vld [vmem:[#allocation13_spill] sm:$0xff]  ;;  %v1308_v0 = vand.u32 4294901760, %v5598_v35  ;;  %v1311_v44 = vand.u32 4294901760, %v5600_v33 }
  0x8c   : > { %3998 = vmatpush1.bf16.msra.mxu1 %v3997_v23  ;;  %v6589_v23 = vand.u32 4294901760, %v6560_v26  ;;  %v5555_v26 = vld [vmem:[#allocation3 + $0x100] sm:$0xff]  ;;  %v6443_v28 = vand.u32 4294901760, %v5583_v22  ;;  %v6442_v34 = vand.u32 4294901760, %v5586_v10  ;;  %v5624_v2 = vsub.f32 %v5490_v43, %v1281_v29 }
  0x8d   : > { %4078 = vmatpush1.bf16.msra.mxu0 %v4077_v24  ;;  %4128 = vmatprep.subr.bf16.mxu1 %v5496_v16  ;;  %v5559_v24 = vsub.f32 %v298_v25, %v1266_v55  ;;  %v5573_v7 = vpack.c.bf16 %v1293_v52, %v1290_v5  ;;  %v1296_v17 = vand.u32 4294901760, %v5555_v26  ;;  %v5579_v25 = vld [vmem:[#allocation3 + $0x148] sm:$0xff]  ;;  %v5651_v40 = vsub.f32 %v5506_v38, %v1287_v39 }
  0x8e   : > { %4080 = vmatprep.subr.bf16.mxu0 %v4079_v3  ;;  %v4089_v46 = vpack.c.bf16 %v6589_v23, %v632_v20  ;;  %v5557_v20 = vld [vmem:[#allocation3 + $0x118] sm:$0xff]  ;;  %v1302_v3 = vand.u32 4294901760, %v5577_v50  ;;  %v1305_v55 = vand.u32 4294901760, %v5579_v25  ;;  %v1384_v62 = vsub.f32 %v5583_v22, %v6443_v28  ;;  %v5860_v28 = vld [vmem:[%s6352_s4 + $0x50] sm:$0xff] }
  0x8f   : > { %706 = vmatmul.mubr.f32.vlgmr.msra.gmra.mrb[0].mxu1 %v5205_v57  ;;  %v1299_v41 = vand.u32 4294901760, %v5557_v20  ;;  %v6445_v14 = vand.u32 4294901760, %v5559_v24  ;;  %v1391_v43 = vsub.f32 %v5586_v10, %v6442_v34  ;;  %6592 = vst [vmem:[#allocation10_spill] sm:$0xff] %v5651_v40  ;;  %v6440_v23 = vand.u32 4294901760, %v5624_v2 }
  0x90   : > { %711 = vmatprep.mubr.f32.mxu1 %v6529_v49  ;;  %4130 = vmatpush3.bf16.msra.mxu1 %v5496_v16 }
  0x91   : > { %4082 = vmatpush1.bf16.msra.mxu0 %v4081_v6  ;;  %4132 = vmatprep.subr.bf16.mxu1 %v5510_v58  ;;  %v5594_v27 = vpack.c.bf16 %v1299_v41, %v1296_v17  ;;  %v1370_v60 = vsub.f32 %v5559_v24, %v6445_v14  ;;  %v5615_v6 = vsub.f32 %v5488_v45, %v1278_v1  ;;  %v1392_v38 = vand.u32 4294901760, %v1391_v43  ;;  %v5887_v14 = vld [vmem:[%s6352_s4 + $0x68] sm:$0xff] }
  0x92   : > { %4084 = vmatprep.subr.bf16.mxu0 %v4083_v30  ;;  %v6591_v30 = vld [vmem:[#allocation15_spill] sm:$0xff]  ;;  %v5632_v45 = vpack.c.bf16 %v1305_v55, %v1302_v3 }
  0x93   : > { %713 = vmatmul.mubr.f32.gmra.mrb[2].mxu1 %v5226_v31  ;;  %v1371_v1 = vand.u32 4294901760, %v1370_v60  ;;  %v6441_v29 = vand.u32 4294901760, %v5615_v6  ;;  %v6595_v60 = vld [vmem:[#allocation20_spill] sm:$0xff] }
  0x94   : > { %4134 = vmatpush3.bf16.msra.mxu1 %v5510_v58  ;;  %3547 = vmatprep.mubr.f32.mxu1 %v5341_v8 }
  0x95   : > { %4086 = vmatpush1.bf16.msra.mxu0 %v4085_v36  ;;  %4136 = vmatprep.subr.bf16.mxu1 %v5523_v12  ;;  %v5646_v36 = vsub.f32 %v5504_v21, %v1284_v48  ;;  %v1385_v48 = vand.u32 4294901760, %v1384_v62  ;;  %v1398_v39 = vsub.f32 %v5615_v6, %v6441_v29  ;;  %v5842_v29 = vld [vmem:[%s6352_s4 + $0x40] sm:$0xff] }
  0x96   : > { %4088 = vmatprep.subr.bf16.mxu0 %v4087_v18  ;;  %v5659_v18 = vpack.c.bf16 %v1311_v44, %v1308_v0 }
  0x98   : > { %4138 = vmatpush3.bf16.msra.mxu1 %v5523_v12 }
  0x99   : > { %4090 = vmatpush1.bf16.msra.mxu0 %v4089_v46  ;;  %4140 = vmatprep.subr.bf16.mxu1 %v5547_v4  ;;  %v6594_v46 = vld [vmem:[#allocation19_spill] sm:$0xff] }
  0x9a   : > { %4092 = vmatprep.subr.bf16.mxu0 %v4091_v9  ;;  %v6439_v9 = vand.u32 4294901760, %v5646_v36 }
  0x9c   : > { %4142 = vmatpush3.bf16.msra.mxu1 %v5547_v4 }
  0x9d   : > { %4094 = vmatpush1.bf16.msra.mxu0 %v4093_v53  ;;  %4144 = vmatprep.subr.bf16.mxu1 %v5573_v7  ;;  %v6437_v53 = vand.u32 4294901760, %v5651_v40 }
  0x9e   : > { %4096 = vmatprep.subr.bf16.mxu0 %v5110_v51  ;;  %v1377_v51 = vsub.f32 %v5561_v32, %v6444_v56 }
  0x9f   : > { %v1419_v62 = vsub.f32 %v5651_v40, %v6437_v53 }
  0xa0   : > { %1141 = vmatmul.mubr.f32.vlgmr.msra.gmra.mrb[0].mxu0 %v5205_v57  ;;  %4146 = vmatpush3.bf16.msra.mxu1 %v5573_v7  ;;  %v1378_v61 = vand.u32 4294901760, %v1377_v51  ;;  %v1405_v51 = vsub.f32 %v5624_v2, %v6440_v23 }
  0xa1   : > { %4098 = vmatpush1.bf16.msra.mxu0 %v6590_v59  ;;  %1146 = vmatprep.mubr.f32.mxu0 %v6529_v49  ;;  %v5678_v59 = vsub.f32 %v5531_v54, %v1290_v5  ;;  %v6596_v54 = vld [vmem:[#allocation21_spill] sm:$0xff]  ;;  %v1399_v5 = vand.u32 4294901760, %v1398_v39  ;;  %v1420_v39 = vand.u32 4294901760, %v1419_v62 }
  0xa2   : > { %4100 = vmatprep.subr.bf16.mxu0 %v6591_v30  ;;  %4148 = vmatprep.subr.bf16.mxu1 %v5594_v27  ;;  %v4159_v21 = vpack.c.bf16 %v1378_v61, %v1371_v1  ;;  %v5683_v30 = vsub.f32 %v5533_v42, %v1293_v52  ;;  %v4163_v1 = vpack.c.bf16 %v1392_v38, %v1385_v48  ;;  %v1406_v43 = vand.u32 4294901760, %v1405_v51  ;;  %v6597_v52 = vld [vmem:[#allocation22_spill] sm:$0xff]  ;;  %v6598_v48 = vld [vmem:[#allocation9_spill] sm:$0xff] }
  0xa3   : > { %v1412_v61 = vsub.f32 %v5646_v36, %v6439_v9  ;;  %v6433_v42 = vand.u32 4294901760, %v5678_v59  ;;  %v1949_v51 = vld [vmem:[%s6352_s4] sm:$0xff]  ;;  %v5825_v9 = vld [vmem:[%s6352_s4 + $0x38] sm:$0xff] }
  0xa4   : > { %1148 = vmatmul.mubr.f32.gmra.mrb[2].mxu0 %v5226_v31  ;;  %4150 = vmatpush3.bf16.msra.mxu1 %v5594_v27  ;;  %v1987_v23 = vand.u32 4294901760, %v5825_v9 }
  0xa5   : > { %4102 = vmatpush1.bf16.msra.mxu0 %v6593_v47  ;;  %1250 = vmatprep.mubr.f32.mxu0 %v6529_v49  ;;  %v5700_v47 = vsub.f32 %v5555_v26, %v1296_v17  ;;  %v1413_v38 = vand.u32 4294901760, %v1412_v61  ;;  %v1950_v26 = vld [vmem:[%s6352_s4 + $0x8] sm:$0xff]  ;;  %v4167_v17 = vpack.c.bf16 %v1406_v43, %v1399_v5  ;;  %v5732_v5 = vsub.f32 %v5579_v25, %v1305_v55 }
  0xa6   : > { %4104 = vmatprep.subr.bf16.mxu0 %v6594_v46  ;;  %4152 = vmatprep.subr.bf16.mxu1 %v5632_v45  ;;  %v5705_v46 = vsub.f32 %v5557_v20, %v1299_v41  ;;  %v1426_v20 = vsub.f32 %v5678_v59, %v6433_v42  ;;  %v1966_v43 = vand.u32 4294901760, %v1949_v51  ;;  %v5744_v25 = vsub.f32 %v5598_v35, %v1308_v0 }
  0xa7   : > { %v6432_v61 = vand.u32 4294901760, %v5700_v47  ;;  %v5749_v55 = vsub.f32 %v5600_v33, %v1311_v44  ;;  %v6434_v33 = vand.u32 4294901760, %v5732_v5 }
  0xa8   : > { %4154 = vmatpush3.bf16.msra.mxu1 %v5632_v45  ;;  %v6431_v62 = vand.u32 4294901760, %v5705_v46  ;;  %v5765_v44 = vsub.f32 %v1949_v51, %v1966_v43  ;;  %v6436_v51 = vand.u32 4294901760, %v5744_v25 }
  0xa9   : > { %4106 = vmatpush1.bf16.msra.mxu0 %v6595_v60  ;;  %4156 = vmatprep.subr.bf16.mxu1 %v5659_v18  ;;  %v6599_v60 = vld [vmem:[#allocation24_spill] sm:$0xff] }
  0xaa   : > { %4108 = vmatprep.subr.bf16.mxu0 %v5203_v37  ;;  %v6430_v37 = vand.u32 4294901760, %v5683_v30  ;;  %v1447_v35 = vsub.f32 %v5705_v46, %v6431_v62  ;;  %v5777_v62 = vld [vmem:[%s6352_s4 + $0x20] sm:$0xff] }
  0xac   : > { %4158 = vmatpush3.bf16.msra.mxu1 %v5659_v18  ;;  %v1433_v41 = vsub.f32 %v5683_v30, %v6430_v37  ;;  %v5739_v37 = vld [vmem:[%s6352_s4 + $0x10] sm:$0xff] }
  0xad   : > { %4110 = vmatpush1.bf16.msra.mxu0 %v6596_v54  ;;  %4160 = vmatprep.subr.bf16.mxu1 %v4159_v21  ;;  %v5727_v54 = vsub.f32 %v5577_v50, %v1302_v3  ;;  %v1427_v50 = vand.u32 4294901760, %v1426_v20 }
  0xae   : > { %4112 = vmatprep.subr.bf16.mxu0 %v6597_v52  ;;  %v1969_v52 = vand.u32 4294901760, %v1950_v26  ;;  %v1434_v3 = vand.u32 4294901760, %v1433_v41 }
  0xaf   : > { %3548 = vmatmul.mubr.f32.vlgmr.msra.gmra.mrb[4].mxu1 %v6598_v48  ;;  %v6435_v0 = vand.u32 4294901760, %v5727_v54 }
  0xb0   : > { %4162 = vmatpush3.bf16.msra.mxu1 %v4159_v21  ;;  %v6600_v21 = vld [vmem:[#allocation25_spill] sm:$0xff]  ;;  %3582 = vmatprep.mubr.f32.mxu1 %v5205_v57  ;;  %v5767_v20 = vsub.f32 %v1950_v26, %v1969_v52  ;;  %v5769_v41 = vpack.c.bf16 %v1969_v52, %v1966_v43  ;;  %v6438_v26 = vand.u32 4294901760, %v5749_v55  ;;  %v1448_v43 = vand.u32 4294901760, %v1447_v35 }
  0xb1   : > { %4114 = vmatpush1.bf16.msra.mxu0 %v6599_v60  ;;  %4164 = vmatprep.subr.bf16.mxu1 %v4163_v1  ;;  %v4171_v60 = vpack.c.bf16 %v1420_v39, %v1413_v38  ;;  %v5755_v38 = vld [vmem:[%s6352_s4 + $0x18] sm:$0xff]  ;;  %v1440_v39 = vsub.f32 %v5700_v47, %v6432_v61  ;;  %v4175_v61 = vpack.c.bf16 %v1434_v3, %v1427_v50  ;;  %v6449_v3 = vand.u32 4294901760, %v5765_v44 }
  0xb2   : > { %4116 = vmatprep.subr.bf16.mxu0 %v6600_v21  ;;  %v6601_v21 = vld [vmem:[#allocation27_spill] sm:$0xff]  ;;  %6603 = vst [vmem:[#allocation11_spill] sm:$0xff] %v5769_v41  ;;  %v1454_v52 = vsub.f32 %v5727_v54, %v6435_v0  ;;  %v1461_v50 = vsub.f32 %v5732_v5, %v6434_v33  ;;  %v6448_v42 = vand.u32 4294901760, %v5767_v20  ;;  %v1468_v35 = vsub.f32 %v5744_v25, %v6436_v51 }
  0xb3   : > { %v1475_v33 = vsub.f32 %v5749_v55, %v6438_v26  ;;  %v5820_v26 = vld [vmem:[%s6352_s4 + $0x30] sm:$0xff] }
  0xb4   : > { %4166 = vmatpush3.bf16.msra.mxu1 %v4163_v1  ;;  %v6602_v1 = vld [vmem:[#allocation28_spill] sm:$0xff]  ;;  %v5808_v0 = vpack.c.bf16 %v6448_v42, %v6449_v3  ;;  %v1455_v51 = vand.u32 4294901760, %v1454_v52  ;;  %v1462_v53 = vand.u32 4294901760, %v1461_v50  ;;  %v1984_v50 = vand.u32 4294901760, %v5820_v26 }
  0xb5   : > { %4118 = vmatpush1.bf16.msra.mxu0 %v6601_v21  ;;  %4168 = vmatprep.subr.bf16.mxu1 %v4167_v17  ;;  %v1972_v21 = vand.u32 4294901760, %v5739_v37 }
  0xb6   : > { %4120 = vmatprep.subr.bf16.mxu0 %v6602_v1  ;;  %v1975_v1 = vand.u32 4294901760, %v5755_v38  ;;  %6604 = vst [vmem:[#allocation12_spill] sm:$0xff] %v5808_v0 }
  0xb8   : > { %4170 = vmatpush3.bf16.msra.mxu1 %v4167_v17  ;;  %v5785_v17 = vld [vmem:[%s6352_s4 + $0x28] sm:$0xff]  ;;  %v5903_v42 = vsub.f32 %v5755_v38, %v1975_v1  ;;  %v5919_v38 = vld [vmem:[%s6352_s4 + $0x78] sm:$0xff] }
  0xb9   : > { %4122 = vmatpush1.bf16.msra.mxu0 %v5302_v63  ;;  %4172 = vmatprep.subr.bf16.mxu1 %v4171_v60  ;;  %v1441_v63 = vand.u32 4294901760, %v1440_v39  ;;  %v6450_v39 = vand.u32 4294901760, %v5785_v17 }
  0xba   : > { %4124 = vmatprep.subr.bf16.mxu0 %v5313_v19  ;;  %v1978_v19 = vand.u32 4294901760, %v5777_v62 }
  0xbc   : > { %4174 = vmatpush3.bf16.msra.mxu1 %v4171_v60  ;;  %v4179_v60 = vpack.c.bf16 %v1448_v43, %v1441_v63  ;;  %v1469_v63 = vand.u32 4294901760, %v1468_v35  ;;  %v1476_v43 = vand.u32 4294901760, %v1475_v33  ;;  %v5835_v52 = vpack.c.bf16 %v6450_v39, %v1978_v19  ;;  %v5847_v33 = vld [vmem:[%s6352_s4 + $0x48] sm:$0xff] }
  0xbd   : > { %4126 = vmatpush1.bf16.msra.mxu0 %v5337_v11  ;;  %4176 = vmatprep.subr.bf16.mxu1 %v4175_v61  ;;  %v5815_v11 = vpack.c.bf16 %v1975_v1, %v1972_v21  ;;  %v6446_v34 = vand.u32 4294901760, %v5847_v33  ;;  %v5926_v39 = vsub.f32 %v5777_v62, %v1978_v19  ;;  %v4199_v1 = vpack.c.bf16 %v5624_v2, %v5615_v6 }
  0xbe   : > { %4320 = vmatprep.subr.bf16.mxu0 %v5769_v41  ;;  %6606 = vst [vmem:[#allocation16_spill] sm:$0xff] %v5835_v52  ;;  %v4187_v35 = vpack.c.bf16 %v1476_v43, %v1469_v63  ;;  %v6452_v43 = vand.u32 4294901760, %v5860_v28  ;;  %v6613_v19 = vand.u32 4294901760, %v5887_v14 }
  0xbf   : > { %6605 = vst [vmem:[#allocation14_spill] sm:$0xff] %v5815_v11 }
  0xc0   : > { %1252 = vmatmul.mubr.f32.vlgmr.msra.gmra.mrb[0].mxu0 %v5205_v57  ;;  %4178 = vmatpush3.bf16.msra.mxu1 %v4175_v61  ;;  %v4183_v61 = vpack.c.bf16 %v1462_v53, %v1455_v51  ;;  %v5853_v53 = vpack.c.bf16 %v1987_v23, %v1984_v50  ;;  %v6447_v51 = vand.u32 4294901760, %v5842_v29 }
  0xc1   : > { %4322 = vmatpush3.bf16.msra.mxu0 %v5769_v41  ;;  %1257 = vmatprep.mubr.f32.mxu0 %v6529_v49 }
  0xc2   : > { %4324 = vmatprep.subr.bf16.mxu0 %v5815_v11  ;;  %4180 = vmatprep.subr.bf16.mxu1 %v4179_v60  ;;  %6607 = vst [vmem:[#allocation17_spill] sm:$0xff] %v5853_v53  ;;  %v5875_v63 = vpack.c.bf16 %v6446_v34, %v6447_v51  ;;  %v5893_v34 = vld [vmem:[%s6352_s4 + $0x70] sm:$0xff]  ;;  %v5898_v51 = vsub.f32 %v5739_v37, %v1972_v21  ;;  %v6611_v37 = vand.u32 4294901760, %v5785_v17  ;;  %v6615_v21 = vand.u32 4294901760, %v5765_v44 }
  0xc4   : > { %1259 = vmatmul.mubr.f32.gmra.mrb[2].mxu0 %v5226_v31  ;;  %4182 = vmatpush3.bf16.msra.mxu1 %v4179_v60  ;;  %v5865_v60 = vld [vmem:[%s6352_s4 + $0x58] sm:$0xff]  ;;  %6608 = vst [vmem:[#allocation13_spill] sm:$0xff] %v5875_v63  ;;  %v5935_v49 = vsub.f32 %v5785_v17, %v6611_v37  ;;  %v2070_v0 = vsub.f32 %v5765_v44, %v6615_v21  ;;  %v6616_v17 = vand.u32 4294901760, %v5767_v20  ;;  %v6618_v21 = vand.u32 4294901760, %v5903_v42 }
  0xc5   : > { %4326 = vmatpush3.bf16.msra.mxu0 %v5815_v11  ;;  %3757 = vmatprep.mubr.f32.mxu0 %v5341_v8  ;;  %v4191_v8 = vpack.c.bf16 %v5561_v32, %v5559_v24  ;;  %v6451_v56 = vand.u32 4294901760, %v5865_v60 }
  0xc6   : > { %4328 = vmatprep.subr.bf16.mxu0 %v5835_v52  ;;  %4184 = vmatprep.subr.bf16.mxu1 %v4183_v61  ;;  %v2077_v37 = vsub.f32 %v5767_v20, %v6616_v17 }
  0xc7   : > { %v5912_v3 = vpack.c.bf16 %v6451_v56, %v6452_v43  ;;  %v6610_v56 = vld [vmem:[#allocation23_spill] sm:$0xff]  ;;  %v2091_v43 = vsub.f32 %v5903_v42, %v6618_v21 }
  0xc8   : > { %4186 = vmatpush3.bf16.msra.mxu1 %v4183_v61  ;;  %v5882_v61 = vld [vmem:[%s6352_s4 + $0x60] sm:$0xff] }
  0xc9   : > { %4330 = vmatpush3.bf16.msra.mxu0 %v5835_v52  ;;  %4188 = vmatprep.subr.bf16.mxu1 %v4187_v35  ;;  %6609 = vst [vmem:[#allocation15_spill] sm:$0xff] %v5912_v3  ;;  %v6612_v62 = vand.u32 4294901760, %v5882_v61  ;;  %v5958_v52 = vsub.f32 %v5825_v9, %v1987_v23  ;;  %v6619_v23 = vand.u32 4294901760, %v5893_v34  ;;  %v6620_v9 = vand.u32 4294901760, %v5919_v38 }
  0xca   : > { %4332 = vmatprep.subr.bf16.mxu0 %v5853_v53  ;;  %v2092_v41 = vand.u32 4294901760, %v2091_v43 }
  0xcc   : > { %4190 = vmatpush3.bf16.msra.mxu1 %v4187_v35  ;;  %v4195_v35 = vpack.c.bf16 %v5586_v10, %v5583_v22 }
  0xcd   : > { %4334 = vmatpush3.bf16.msra.mxu0 %v5853_v53  ;;  %4192 = vmatprep.subr.bf16.mxu1 %v4191_v8  ;;  %v5955_v53 = vsub.f32 %v5820_v26, %v1984_v50  ;;  %v4203_v26 = vpack.c.bf16 %v5651_v40, %v5646_v36  ;;  %v5975_v50 = vpack.c.bf16 %v6620_v9, %v6619_v23  ;;  %v6621_v40 = vand.u32 4294901760, %v5935_v49 }
  0xce   : > { %4336 = vmatprep.subr.bf16.mxu0 %v5875_v63  ;;  %v6622_v9 = vand.u32 4294901760, %v5842_v29 }
  0xcf   : > { %3583 = vmatmul.mubr.f32.vlgmr.msra.gmra.mrb[4].mxu1 %v5226_v31  ;;  %v6471_v17 = vand.u32 4294901760, %v5955_v53  ;;  %v2105_v23 = vsub.f32 %v5935_v49, %v6621_v40 }
  0xd0   : > { %4194 = vmatpush3.bf16.msra.mxu1 %v4191_v8  ;;  %3617 = vmatprep.mubr.f32.mxu1 %v6610_v56  ;;  %v5944_v8 = vpack.c.bf16 %v6613_v19, %v6612_v62  ;;  %v6617_v62 = vand.u32 4294901760, %v5898_v51 }
  0xd1   : > { %4338 = vmatpush3.bf16.msra.mxu0 %v5875_v63  ;;  %4196 = vmatprep.subr.bf16.mxu1 %v4195_v35  ;;  %v6468_v63 = vand.u32 4294901760, %v5926_v39  ;;  %v2112_v40 = vsub.f32 %v5955_v53, %v6471_v17  ;;  %v6625_v17 = vand.u32 4294901760, %v5865_v60 }
  0xd2   : > { %4340 = vmatprep.subr.bf16.mxu0 %v5912_v3  ;;  %6614 = vst [vmem:[#allocation18_spill] sm:$0xff] %v5944_v8  ;;  %v2084_v19 = vsub.f32 %v5898_v51, %v6617_v62  ;;  %v2078_v62 = vand.u32 4294901760, %v2077_v37 }
  0xd3   : > { %v2098_v21 = vsub.f32 %v5926_v39, %v6468_v63  ;;  %v5992_v63 = vsub.f32 %v5842_v29, %v6622_v9  ;;  %v2106_v29 = vand.u32 4294901760, %v2105_v23  ;;  %v6624_v9 = vand.u32 4294901760, %v5860_v28 }
  0xd4   : > { %4198 = vmatpush3.bf16.msra.mxu1 %v4195_v35  ;;  %v2071_v35 = vand.u32 4294901760, %v2070_v0  ;;  %v2085_v11 = vand.u32 4294901760, %v2084_v19  ;;  %v4207_v0 = vpack.c.bf16 %v5683_v30, %v5678_v59  ;;  %v6626_v23 = vand.u32 4294901760, %v5882_v61 }
  0xd5   : > { %4342 = vmatpush3.bf16.msra.mxu0 %v5912_v3  ;;  %4200 = vmatprep.subr.bf16.mxu1 %v4199_v1  ;;  %v6472_v3 = vand.u32 4294901760, %v5958_v52 }
  0xd6   : > { %4344 = vmatprep.subr.bf16.mxu0 %v5944_v8  ;;  %v4351_v37 = vpack.c.bf16 %v2078_v62, %v2071_v35  ;;  %v4355_v35 = vpack.c.bf16 %v2092_v41, %v2085_v11  ;;  %v2099_v62 = vand.u32 4294901760, %v2098_v21  ;;  %v4211_v41 = vpack.c.bf16 %v5705_v46, %v5700_v47 }
  0xd7   : > { %v2119_v19 = vsub.f32 %v5958_v52, %v6472_v3  ;;  %v2113_v11 = vand.u32 4294901760, %v2112_v40  ;;  %v6627_v3 = vand.u32 4294901760, %v5887_v14 }
  0xd8   : > { %4202 = vmatpush3.bf16.msra.mxu1 %v4199_v1  ;;  %v6623_v1 = vand.u32 4294901760, %v5847_v33 }
  0xd9   : > { %4346 = vmatpush3.bf16.msra.mxu0 %v5944_v8  ;;  %4204 = vmatprep.subr.bf16.mxu1 %v4203_v26  ;;  %v6009_v8 = vsub.f32 %v5860_v28, %v6624_v9  ;;  %v2120_v21 = vand.u32 4294901760, %v2119_v19  ;;  %v6025_v9 = vsub.f32 %v5882_v61, %v6626_v23  ;;  %v4219_v23 = vpack.c.bf16 %v5749_v55, %v5744_v25 }
  0xda   : > { %4348 = vmatprep.subr.bf16.mxu0 %v5975_v50  ;;  %v5997_v43 = vsub.f32 %v5847_v33, %v6623_v1  ;;  %v2125_v33 = vand.u32 4294901760, %v5992_v63 }
  0xdb   : > { %v6473_v28 = vand.u32 4294901760, %v6009_v8 }
  0xdc   : > { %4206 = vmatpush3.bf16.msra.mxu1 %v4203_v26  ;;  %v6474_v1 = vand.u32 4294901760, %v5997_v43  ;;  %v6016_v26 = vsub.f32 %v5865_v60, %v6625_v17  ;;  %v6030_v60 = vsub.f32 %v5887_v14, %v6627_v3  ;;  %v4359_v17 = vpack.c.bf16 %v2106_v29, %v2099_v62 }
  0xdd   : > { %4350 = vmatpush3.bf16.msra.mxu0 %v5975_v50  ;;  %4208 = vmatprep.subr.bf16.mxu1 %v4207_v0  ;;  %v4363_v14 = vpack.c.bf16 %v2120_v21, %v2113_v11  ;;  %v6628_v3 = vand.u32 4294901760, %v5893_v34  ;;  %v2140_v19 = vsub.f32 %v6009_v8, %v6473_v28  ;;  %v2153_v62 = vand.u32 4294901760, %v6025_v9 }
  0xde   : > { %4352 = vmatprep.subr.bf16.mxu0 %v4351_v37  ;;  %v2133_v61 = vsub.f32 %v5997_v43, %v6474_v1  ;;  %v2160_v29 = vand.u32 4294901760, %v6030_v60 }
  0xdf   : > { %v6045_v40 = vsub.f32 %v5893_v34, %v6628_v3  ;;  %v2141_v3 = vand.u32 4294901760, %v2140_v19  ;;  %v2154_v28 = vsub.f32 %v6025_v9, %v2153_v62 }
  0xe0   : > { %3758 = vmatmul.mubr.f32.vlgmr.msra.gmra.mrb[4].mxu0 %v6598_v48  ;;  %4210 = vmatpush3.bf16.msra.mxu1 %v4207_v0  ;;  %v4215_v48 = vpack.c.bf16 %v5732_v5, %v5727_v54  ;;  %v2126_v0 = vsub.f32 %v5992_v63, %v2125_v33  ;;  %v2134_v21 = vand.u32 4294901760, %v2133_v61 }
  0xe1   : > { %4354 = vmatpush3.bf16.msra.mxu0 %v4351_v37  ;;  %3792 = vmatprep.mubr.f32.mxu0 %v5205_v57  ;;  %v6475_v37 = vand.u32 4294901760, %v6016_v26  ;;  %v2167_v1 = vand.u32 4294901760, %v6045_v40  ;;  %v2155_v19 = vand.u32 4294901760, %v2154_v28 }
  0xe2   : > { %4356 = vmatprep.subr.bf16.mxu0 %v4355_v35  ;;  %4212 = vmatprep.subr.bf16.mxu1 %v4211_v41  ;;  %v2127_v11 = vand.u32 4294901760, %v2126_v0 }
  0xe3   : > { %v2147_v34 = vsub.f32 %v6016_v26, %v6475_v37  ;;  %v2161_v37 = vsub.f32 %v6030_v60, %v2160_v29 }
  0xe4   : > { %4214 = vmatpush3.bf16.msra.mxu1 %v4211_v41  ;;  %v4367_v0 = vpack.c.bf16 %v2134_v21, %v2127_v11  ;;  %v6630_v21 = vld [vmem:[#allocation26_spill] sm:$0xff] }
  0xe5   : > { %4358 = vmatpush3.bf16.msra.mxu0 %v4355_v35  ;;  %4216 = vmatprep.subr.bf16.mxu1 %v4215_v48  ;;  %v6629_v35 = vand.u32 4294901760, %v5919_v38  ;;  %v2148_v61 = vand.u32 4294901760, %v2147_v34 }
  0xe6   : > { %4360 = vmatprep.subr.bf16.mxu0 %v4359_v17 }
  0xe7   : > { %v6060_v41 = vsub.f32 %v5919_v38, %v6629_v35  ;;  %v2162_v35 = vand.u32 4294901760, %v2161_v37  ;;  %v4383_v37 = vpack.c.bf16 %v5767_v20, %v5765_v44  ;;  %v4391_v44 = vpack.c.bf16 %v5935_v49, %v5926_v39 }
  0xe8   : > { %4218 = vmatpush3.bf16.msra.mxu1 %v4215_v48  ;;  %v2168_v48 = vsub.f32 %v6045_v40, %v2167_v1  ;;  %v4395_v20 = vpack.c.bf16 %v5958_v52, %v5955_v53 }
  0xe9   : > { %4362 = vmatpush3.bf16.msra.mxu0 %v4359_v17  ;;  %4220 = vmatprep.subr.bf16.mxu1 %v4219_v23  ;;  %v2174_v38 = vand.u32 4294901760, %v6060_v41  ;;  %v4371_v17 = vpack.c.bf16 %v2148_v61, %v2141_v3  ;;  %v4387_v3 = vpack.c.bf16 %v5903_v42, %v5898_v51 }
  0xea   : > { %4364 = vmatprep.subr.bf16.mxu0 %v4363_v14 }
  0xeb   : > { %v2175_v11 = vsub.f32 %v6060_v41, %v2174_v38 }
  0xec   : > { %4222 = vmatpush3.bf16.msra.mxu1 %v4219_v23  ;;  %v2169_v23 = vand.u32 4294901760, %v2168_v48  ;;  %v4399_v48 = vpack.c.bf16 %v5997_v43, %v5992_v63 }
  0xed   : > { %4366 = vmatpush3.bf16.msra.mxu0 %v4363_v14  ;;  %4224 = vmatprep.subr.bf16.mxu1 %v5496_v16  ;;  %v4375_v14 = vpack.c.bf16 %v2162_v35, %v2155_v19  ;;  %v2176_v34 = vand.u32 4294901760, %v2175_v11  ;;  %v6634_v19 = vand.u32 4294901760, %v5586_v10  ;;  %v6636_v11 = vand.u32 4294901760, %v5624_v2 }
  0xee   : > { %4368 = vmatprep.subr.bf16.mxu0 %v4367_v0  ;;  %v4407_v10 = vpack.c.bf16 %v6030_v60, %v6025_v9  ;;  %v6641_v2 = vand.u32 4294901760, %v5683_v30  ;;  %v6646_v30 = vand.u32 4294901760, %v5732_v5  ;;  %v6653_v5 = vld [vmem:[#allocation15_spill] sm:$0xff]  ;;  %v6242_v9 = vld [vmem:[%s6351_s3] sm:$0x7] }
  0xef   : > { %3618 = vmatmul.mubr.f32.vlgmr.msra.gmra.mrb[4].mxu1 %v6630_v21  ;;  %v4379_v28 = vpack.c.bf16 %v2176_v34, %v2169_v23  ;;  %v6638_v23 = vld [vmem:[#allocation10_spill] sm:$0xff] }
  0xf0   : > { %4226 = vmatpush3.bf16.msra.mxu1 %v5496_v16  ;;  %3652 = vmatprep.mubr.f32.mxu1 %v5275_v13  ;;  %v6639_v34 = vand.u32 4294901760, %v6638_v23  ;;  %v2654_v23 = vld [vmem:[%s6353_s5 + $0x8] sm:$0xff] }
  0xf1   : > { %4370 = vmatpush3.bf16.msra.mxu0 %v4367_v0  ;;  %4228 = vmatprep.subr.bf16.mxu1 %v5510_v58  ;;  %v6632_v0 = vand.u32 4294901760, %v5561_v32  ;;  %v6635_v32 = vand.u32 4294901760, %v5615_v6  ;;  %v6640_v6 = vand.u32 4294901760, %v5678_v59  ;;  %v6645_v59 = vand.u32 4294901760, %v5727_v54  ;;  %v6652_v54 = vld [vmem:[#allocation13_spill] sm:$0xff] }
  0xf2   : > { %4372 = vmatprep.subr.bf16.mxu0 %v4371_v17 }
  0xf4   : > { %4230 = vmatpush3.bf16.msra.mxu1 %v5510_v58 }
  0xf5   : > { %4374 = vmatpush3.bf16.msra.mxu0 %v4371_v17  ;;  %4232 = vmatprep.subr.bf16.mxu1 %v5523_v12  ;;  %v6633_v17 = vand.u32 4294901760, %v5583_v22  ;;  %v4263_v22 = vpack.c.bf16 %v6636_v11, %v6635_v32 }
  0xf6   : > { %4376 = vmatprep.subr.bf16.mxu0 %v4375_v14 }
  0xf7   : > { %v4259_v35 = vpack.c.bf16 %v6634_v19, %v6633_v17 }
  0xf8   : > { %4234 = vmatpush3.bf16.msra.mxu1 %v5523_v12 }
  0xf9   : > { %4378 = vmatpush3.bf16.msra.mxu0 %v4375_v14  ;;  %4236 = vmatprep.subr.bf16.mxu1 %v5547_v4  ;;  %v6637_v14 = vand.u32 4294901760, %v5646_v36  ;;  %v6642_v36 = vld [vmem:[#allocation11_spill] sm:$0xff] }
  0xfa   : > { %4380 = vmatprep.subr.bf16.mxu0 %v4379_v28 }
  0xfc   : > { %4238 = vmatpush3.bf16.msra.mxu1 %v5547_v4 }
  0xfd   : > { %4382 = vmatpush3.bf16.msra.mxu0 %v4379_v28  ;;  %4240 = vmatprep.subr.bf16.mxu1 %v5573_v7  ;;  %v4267_v28 = vpack.c.bf16 %v6639_v34, %v6637_v14  ;;  %v2653_v34 = vld [vmem:[%s6353_s5] sm:$0xff] }
  0xfe   : > { %4384 = vmatprep.subr.bf16.mxu0 %v4383_v37 }
 0x100   : > { %3793 = vmatmul.mubr.f32.vlgmr.msra.gmra.mrb[4].mxu0 %v5226_v31  ;;  %4242 = vmatpush3.bf16.msra.mxu1 %v5573_v7 }
 0x101   : > { %4386 = vmatpush3.bf16.msra.mxu0 %v4383_v37  ;;  %3827 = vmatprep.mubr.f32.mxu0 %v6610_v56  ;;  %v6631_v56 = vand.u32 4294901760, %v5559_v24  ;;  %v4403_v24 = vpack.c.bf16 %v6016_v26, %v6009_v8  ;;  %v4411_v37 = vpack.c.bf16 %v6060_v41, %v6045_v40 }
 0x102   : > { %4388 = vmatprep.subr.bf16.mxu0 %v4387_v3  ;;  %4244 = vmatprep.subr.bf16.mxu1 %v5594_v27 }
 0x103   : > { %v4255_v61 = vpack.c.bf16 %v6632_v0, %v6631_v56  ;;  %v4279_v0 = vpack.c.bf16 %v6646_v30, %v6645_v59 }
 0x104   : > { %4246 = vmatpush3.bf16.msra.mxu1 %v5594_v27 }
 0x105   : > { %4390 = vmatpush3.bf16.msra.mxu0 %v4387_v3  ;;  %4248 = vmatprep.subr.bf16.mxu1 %v5632_v45  ;;  %v4271_v3 = vpack.c.bf16 %v6641_v2, %v6640_v6 }
 0x106   : > { %4392 = vmatprep.subr.bf16.mxu0 %v4391_v44 }
 0x108   : > { %4250 = vmatpush3.bf16.msra.mxu1 %v5632_v45 }
 0x109   : > { %4394 = vmatpush3.bf16.msra.mxu0 %v4391_v44  ;;  %4252 = vmatprep.subr.bf16.mxu1 %v5659_v18  ;;  %v6643_v44 = vand.u32 4294901760, %v5700_v47  ;;  %v6648_v47 = vand.u32 4294901760, %v5744_v25  ;;  %v6654_v25 = vld [vmem:[#allocation18_spill] sm:$0xff] }
 0x10a   : > { %4396 = vmatprep.subr.bf16.mxu0 %v4395_v20 }
 0x10c   : > { %4254 = vmatpush3.bf16.msra.mxu1 %v5659_v18 }
 0x10d   : > { %4398 = vmatpush3.bf16.msra.mxu0 %v4395_v20  ;;  %4256 = vmatprep.subr.bf16.mxu1 %v4255_v61  ;;  %v6644_v20 = vand.u32 4294901760, %v5705_v46  ;;  %v6649_v46 = vand.u32 4294901760, %v5749_v55  ;;  %v6657_v55 = vand.u32 4294901760, %v5903_v42 }
 0x10e   : > { %4400 = vmatprep.subr.bf16.mxu0 %v4399_v48 }
 0x10f   : > { %3653 = vmatmul.mubr.f32.vlgmr.msra.gmra.mrb[4].mxu1 %v5363_v15  ;;  %v4275_v56 = vpack.c.bf16 %v6644_v20, %v6643_v44 }
 0x110   : > { %4258 = vmatpush3.bf16.msra.mxu1 %v4255_v61  ;;  %3687 = vmatprep.mubr.f32.mxu1 %v5205_v57  ;;  %v6647_v61 = vld [vmem:[#allocation14_spill] sm:$0xff] }
 0x111   : > { %4402 = vmatpush3.bf16.msra.mxu0 %v4399_v48  ;;  %4260 = vmatprep.subr.bf16.mxu1 %v4259_v35  ;;  %v6650_v48 = vld [vmem:[#allocation16_spill] sm:$0xff] }
 0x112   : > { %4404 = vmatprep.subr.bf16.mxu0 %v4403_v24 }
 0x114   : > { %4262 = vmatpush3.bf16.msra.mxu1 %v4259_v35 }
 0x115   : > { %4406 = vmatpush3.bf16.msra.mxu0 %v4403_v24  ;;  %4264 = vmatprep.subr.bf16.mxu1 %v4263_v22 }
 0x116   : > { %4408 = vmatprep.subr.bf16.mxu0 %v4407_v10 }
 0x118   : > { %4266 = vmatpush3.bf16.msra.mxu1 %v4263_v22 }
 0x119   : > { %4410 = vmatpush3.bf16.msra.mxu0 %v4407_v10  ;;  %4268 = vmatprep.subr.bf16.mxu1 %v4267_v28 }
 0x11a   : > { %4412 = vmatprep.subr.bf16.mxu0 %v4411_v37 }
 0x11c   : > { %4270 = vmatpush3.bf16.msra.mxu1 %v4267_v28  ;;  %v2662_v28 = vand.u32 4294901760, %v2654_v23 }
 0x11d   : > { %4414 = vmatpush3.bf16.msra.mxu0 %v4411_v37  ;;  %4272 = vmatprep.subr.bf16.mxu1 %v4271_v3  ;;  %v2664_v37 = vand.u32 4294901760, %v2653_v34 }
 0x11e   : > { %4416 = vmatprep.subr.bf16.mxu0 %v6642_v36  ;;  %v2752_v6 = vsub.f32 %v2654_v23, %v2662_v28 }
 0x11f   : > { %v2758_v30 = vsub.f32 %v2653_v34, %v2664_v37 }
 0x120   : > { %3828 = vmatmul.mubr.f32.vlgmr.msra.gmra.mrb[4].mxu0 %v6630_v21  ;;  %4274 = vmatpush3.bf16.msra.mxu1 %v4271_v3  ;;  %v4283_v21 = vpack.c.bf16 %v6649_v46, %v6648_v47  ;;  %v2753_v2 = vand.u32 4294901760, %v2752_v6 }
 0x121   : > { %4418 = vmatpush3.bf16.msra.mxu0 %v6642_v36  ;;  %3862 = vmatprep.mubr.f32.mxu0 %v5275_v13  ;;  %v6651_v13 = vld [vmem:[#allocation17_spill] sm:$0xff] }
 0x122   : > { %4420 = vmatprep.subr.bf16.mxu0 %v6647_v61  ;;  %4276 = vmatprep.subr.bf16.mxu1 %v4275_v56  ;;  %v2754_v3 = vsub.f32 %v2752_v6, %v2753_v2 }
 0x124   : > { %4278 = vmatpush3.bf16.msra.mxu1 %v4275_v56  ;;  %v2650_v56 = vstv %s2649_s12 }
 0x125   : > { %4422 = vmatpush3.bf16.msra.mxu0 %v6647_v61  ;;  %4280 = vmatprep.subr.bf16.mxu1 %v4279_v0 }
 0x126   : > { %4424 = vmatprep.subr.bf16.mxu0 %v6650_v48 }
 0x128   : > { %4282 = vmatpush3.bf16.msra.mxu1 %v4279_v0 }
 0x129   : > { %4426 = vmatpush3.bf16.msra.mxu0 %v6650_v48  ;;  %4284 = vmatprep.subr.bf16.mxu1 %v4283_v21 }
 0x12a   : > { %4428 = vmatprep.subr.bf16.mxu0 %v6651_v13 }
 0x12c   : > { %4286 = vmatpush3.bf16.msra.mxu1 %v4283_v21 }
 0x12d   : > { %4430 = vmatpush3.bf16.msra.mxu0 %v6651_v13  ;;  %4288 = vmatprep.subr.bf16.mxu1 %v5496_v16 }
 0x12e   : > { %4432 = vmatprep.subr.bf16.mxu0 %v6652_v54 }
 0x12f   : > { %3688 = vmatmul.mubr.f32.vlgmr.msra.gmra.mrb[4].mxu1 %v5226_v31 }
 0x130   : > { %4290 = vmatpush3.bf16.msra.mxu1 %v5496_v16  ;;  %3722 = vmatprep.mubr.f32.mxu1 %v5205_v57  ;;  %v6655_v16 = vld [vmem:[#allocation12_spill] sm:$0xff] }
 0x131   : > { %4434 = vmatpush3.bf16.msra.mxu0 %v6652_v54  ;;  %4292 = vmatprep.subr.bf16.mxu1 %v5510_v58 }
 0x132   : > { %4436 = vmatprep.subr.bf16.mxu0 %v6653_v5 }
 0x134   : > { %4294 = vmatpush3.bf16.msra.mxu1 %v5510_v58  ;;  %v6656_v58 = vand.u32 4294901760, %v5898_v51  ;;  %v4471_v51 = vpack.c.bf16 %v2160_v29, %v2153_v62 }
 0x135   : > { %4438 = vmatpush3.bf16.msra.mxu0 %v6653_v5  ;;  %4296 = vmatprep.subr.bf16.mxu1 %v5523_v12 }
 0x136   : > { %4440 = vmatprep.subr.bf16.mxu0 %v6654_v25  ;;  %v4451_v17 = vpack.c.bf16 %v6657_v55, %v6656_v58 }
 0x138   : > { %4298 = vmatpush3.bf16.msra.mxu1 %v5523_v12  ;;  %v6658_v12 = vand.u32 4294901760, %v5926_v39  ;;  %v6663_v39 = vand.u32 4294901760, %v6009_v8 }
 0x139   : > { %4442 = vmatpush3.bf16.msra.mxu0 %v6654_v25  ;;  %4300 = vmatprep.subr.bf16.mxu1 %v5547_v4 }
 0x13a   : > { %4444 = vmatprep.subr.bf16.mxu0 %v5975_v50 }
 0x13c   : > { %4302 = vmatpush3.bf16.msra.mxu1 %v5547_v4  ;;  %v6659_v4 = vand.u32 4294901760, %v5935_v49  ;;  %v6662_v49 = vand.u32 4294901760, %v5997_v43 }
 0x13d   : > { %4446 = vmatpush3.bf16.msra.mxu0 %v5975_v50  ;;  %4304 = vmatprep.subr.bf16.mxu1 %v5573_v7 }
 0x13e   : > { %4448 = vmatprep.subr.bf16.mxu0 %v6655_v16  ;;  %v4455_v19 = vpack.c.bf16 %v6659_v4, %v6658_v12 }
 0x140   : > { %3863 = vmatmul.mubr.f32.vlgmr.msra.gmra.mrb[4].mxu0 %v5363_v15  ;;  %4306 = vmatpush3.bf16.msra.mxu1 %v5573_v7  ;;  %v6660_v15 = vand.u32 4294901760, %v5955_v53  ;;  %v6661_v7 = vand.u32 4294901760, %v5958_v52  ;;  %v6664_v52 = vand.u32 4294901760, %v6016_v26 }
 0x141   : > { %4450 = vmatpush3.bf16.msra.mxu0 %v6655_v16  ;;  %3897 = vmatprep.mubr.f32.mxu0 %v5205_v57 }
 0x142   : > { %4452 = vmatprep.subr.bf16.mxu0 %v4451_v17  ;;  %4308 = vmatprep.subr.bf16.mxu1 %v5594_v27  ;;  %v4459_v42 = vpack.c.bf16 %v6661_v7, %v6660_v15  ;;  %v4467_v53 = vpack.c.bf16 %v6664_v52, %v6663_v39 }
 0x144   : > { %4310 = vmatpush3.bf16.msra.mxu1 %v5594_v27  ;;  %v4463_v27 = vpack.c.bf16 %v6662_v49, %v2125_v33 }
 0x145   : > { %4454 = vmatpush3.bf16.msra.mxu0 %v4451_v17  ;;  %4312 = vmatprep.subr.bf16.mxu1 %v5632_v45 }
 0x146   : > { %4456 = vmatprep.subr.bf16.mxu0 %v4455_v19 }
 0x148   : > { %4314 = vmatpush3.bf16.msra.mxu1 %v5632_v45  ;;  %v6665_v45 = vmov 0.0  }
 0x149   : > { %4458 = vmatpush3.bf16.msra.mxu0 %v4455_v19  ;;  %4316 = vmatprep.subr.bf16.mxu1 %v5659_v18 }
 0x14a   : > { %4460 = vmatprep.subr.bf16.mxu0 %v4459_v42 }
 0x14c   : > { %4318 = vmatpush3.bf16.msra.mxu1 %v5659_v18  ;;  %v4475_v18 = vpack.c.bf16 %v2174_v38, %v2167_v1 }
 0x14d   : > { %4462 = vmatpush3.bf16.msra.mxu0 %v4459_v42  ;;  %2663 = vmatprep.subr.mxu1 %v2662_v28 }
 0x14e   : > { %4464 = vmatprep.subr.bf16.mxu0 %v4463_v27 }
 0x14f   : > { %3723 = vmatmul.mubr.f32.vlgmr.msra.gmra.mrb[4].mxu1 %v5226_v31 }
 0x150   : > { %2728 = vmatprep.mubr.f32.mxu1 %v6665_v45  ;;  %2665 = vmatpush1.msra.mxu1 %v2664_v37 }
 0x151   : > { %4466 = vmatpush3.bf16.msra.mxu0 %v4463_v27 }
 0x152   : > { %4468 = vmatprep.subr.bf16.mxu0 %v4467_v53 }
 0x155   : > { %4470 = vmatpush3.bf16.msra.mxu0 %v4467_v53 }
 0x156   : > { %4472 = vmatprep.subr.bf16.mxu0 %v4471_v51 }
 0x159   : > { %4474 = vmatpush3.bf16.msra.mxu0 %v4471_v51 }
 0x15a   : > { %4476 = vmatprep.subr.bf16.mxu0 %v4475_v18 }
 0x15d   : > { %4478 = vmatpush3.bf16.msra.mxu0 %v4475_v18 }
 0x15e   : > { %4480 = vmatprep.subr.bf16.mxu0 %v6642_v36 }
 0x160   : > { %3898 = vmatmul.mubr.f32.vlgmr.msra.gmra.mrb[4].mxu0 %v5226_v31 }
 0x161   : > { %4482 = vmatpush3.bf16.msra.mxu0 %v6642_v36  ;;  %3932 = vmatprep.mubr.f32.mxu0 %v5205_v57  ;;  %v346_v57 = vlaneseq  ;;  %v2755_v36 = vand.u32 4294901760, %v2754_v3 }
 0x162   : > { %4484 = vmatprep.subr.bf16.mxu0 %v6647_v61  ;;  %v707_v63 = vpop.f32.mrb[0].mxu1 }
 0x163   : > { %v709_v8 = vpop.f32.mrb[1].mxu1  ;;  %v6236_v1 = vshrl.u32 %v346_v57, 7  ;;  %2756 = vmatprep.subr.mxu1 %v2755_v36 }
 0x165   : > { %4486 = vmatpush3.bf16.msra.mxu0 %v6647_v61  ;;  %v348_v26 = vsub.s32 0, %v6236_v1  ;;  %v352_v60 = vsub.s32 1, %v6236_v1  ;;  %v356_v7 = vsub.s32 2, %v6236_v1 }
 0x166   : > { %4488 = vmatprep.subr.bf16.mxu0 %v6650_v48  ;;  %v714_v43 = vpop.f32.mrb[2].mxu1 }
 0x167   : > { %v716_v33 = vpop.f32.mrb[3].mxu1  ;;  %v349_v40 = vrot.slane %v6242_v9, %v348_v26  ;;  %v353_v62 = vrot.slane %v6242_v9, %v352_v60  ;;  %v357_v42 = vrot.slane %v6242_v9, %v356_v7 }
 0x169   : > { %4490 = vmatpush3.bf16.msra.mxu0 %v6650_v48  ;;  %v4511_v29 = vadd.f32 %v707_v63, %v349_v40  ;;  %v4515_v35 = vadd.f32 %v714_v43, %v349_v40  ;;  %v4517_v32 = vadd.f32 %v716_v33, %v353_v62 }
 0x16a   : > { %4492 = vmatprep.subr.bf16.mxu0 %v6651_v13 }
 0x16d   : > { %4494 = vmatpush3.bf16.msra.mxu0 %v6651_v13  ;;  %v2759_v13 = vand.u32 4294901760, %v2758_v30 }
 0x16e   : > { %4496 = vmatprep.subr.bf16.mxu0 %v6652_v54 }
 0x16f   : > { %v2760_v16 = vsub.f32 %v2758_v30, %v2759_v13 }
 0x171   : > { %4498 = vmatpush3.bf16.msra.mxu0 %v6652_v54  ;;  %v2761_v12 = vand.u32 4294901760, %v2760_v16 }
 0x172   : > { %4500 = vmatprep.subr.bf16.mxu0 %v6653_v5 }
 0x175   : > { %4502 = vmatpush3.bf16.msra.mxu0 %v6653_v5 }
 0x176   : > { %4504 = vmatprep.subr.bf16.mxu0 %v6654_v25 }
 0x179   : > { %4506 = vmatpush3.bf16.msra.mxu0 %v6654_v25 }
 0x17a   : > { %4508 = vmatprep.subr.bf16.mxu0 %v5975_v50 }
 0x17d   : > { %4510 = vmatpush3.bf16.msra.mxu0 %v5975_v50 }
 0x180   : > { %3933 = vmatmul.mubr.f32.vlgmr.msra.gmra.mrb[4].mxu0 %v5226_v31  ;;  %v4513_v31 = vadd.f32 %v709_v8, %v353_v62 }
 0x193   : > { %v1253_v50 = vpop.f32.mrb[0].mxu0 }
 0x194   : > { %v6249_v41 = vadd.f32 %v4511_v29, %v1253_v50  ;;  %v1255_v38 = vpop.f32.mrb[1].mxu0 }
 0x195   : > { %v4514_v24 = vadd.f32 %v4513_v31, %v1255_v38 }
 0x197   : > { %3180 = vst [vmem:[%s6251_s22 + $0x8] sm:$0xff] %v4514_v24  ;;  %v1260_v11 = vpop.f32.mrb[2].mxu0 }
 0x198   : > { %v6254_v22 = vadd.f32 %v4515_v35, %v1260_v11  ;;  %v1262_v10 = vpop.f32.mrb[3].mxu0 }
 0x199   : > { %v4518_v14 = vadd.f32 %v4517_v32, %v1262_v10 }
 0x19b   : > { %3181 = vst [vmem:[%s6251_s22 + $0x20] sm:$0xff] %v4518_v14 }
 0x222   : > { %v6263_v44 = vpop.f32.mrb[4].mxu1 }
 0x223   : > { %v1939_v20 = vpop.f32.mrb[5].mxu1  ;;  %v4519_v51 = vadd.f32 %v6263_v44, %v357_v42 }
 0x224   : > { %v4520_v49 = vadd.f32 %v1939_v20, %v357_v42 }
 0x253   : > { %v3934_v59 = vpop.f32.mrb[4].mxu0 }
 0x254   : > { %v2652_v0 = vmul.f32 %v3934_v59, %v2650_v56  ;;  %v2639_v61 = vpop.f32.mrb[5].mxu0 }
 0x255   : > { %v2651_v47 = vmul.f32 %v2650_v56, %v2639_v61 }
 0x256   : > { %v2660_v46 = vsel %vm2655_vm0, %v2652_v0, 0 }
 0x257   : > { %v2740_v21 = vand.u32 4294901760, %v2660_v46  ;;  %v2657_v48 = vsel %vm2655_vm0, %v2651_v47, 0 }
 0x258   : > { %v2729_v54 = vand.u32 4294901760, %v2657_v48 }
 0x259   : > { %v2741_v5 = vsub.f32 %v2660_v46, %v2740_v21 }
 0x25a   : > { %v2730_v25 = vsub.f32 %v2657_v48, %v2729_v54 }
 0x25b   : > { %v2742_v55 = vand.u32 4294901760, %v2741_v5 }
 0x25c   : > { %v2731_v58 = vand.u32 4294901760, %v2730_v25 }
 0x25d   : > { %v2743_v19 = vsub.f32 %v2741_v5, %v2742_v55 }
 0x25e   : > { %v2732_v17 = vsub.f32 %v2730_v25, %v2731_v58 }
 0x25f   : > { %v2744_v15 = vand.u32 4294901760, %v2743_v19 }
 0x260   : > { %v2733_v4 = vand.u32 4294901760, %v2732_v17 }
 0x262   : > { %2734 = vmatmul.mubr.f32.vlgmr.msra.gmra.mrb[6].mxu1 %v2733_v4 }
 0x263   : > { %2762 = vmatpush1.msra.mxu1 %v2761_v12  ;;  %2739 = vmatprep.mubr.f32.mxu1 %v6665_v45 }
 0x264   : > { %2842 = vmatprep.subr.mxu1 %v2752_v6 }
 0x266   : > { %2745 = vmatmul.mubr.f32.gmra.mrb[8].mxu1 %v2744_v15 }
 0x267   : > { %2825 = vmatprep.mubr.f32.mxu1 %v6665_v45 }
 0x26a   : > { %2827 = vmatmul.mubr.f32.vlgmr.msra.gmra.mrb[6].mxu1 %v2729_v54 }
 0x26b   : > { %2845 = vmatpush1.msra.mxu1 %v2758_v30  ;;  %2832 = vmatprep.mubr.f32.mxu1 %v6665_v45 }
 0x26c   : > { %2926 = vmatprep.subr.mxu1 %v2662_v28 }
 0x26e   : > { %2834 = vmatmul.mubr.f32.gmra.mrb[8].mxu1 %v2740_v21 }
 0x26f   : > { %2908 = vmatprep.mubr.f32.mxu1 %v6665_v45 }
 0x272   : > { %2911 = vmatmul.mubr.f32.vlgmr.msra.gmra.mrb[6].mxu1 %v2730_v25 }
 0x273   : > { %2928 = vmatpush1.msra.mxu1 %v2664_v37  ;;  %2916 = vmatprep.mubr.f32.mxu1 %v6665_v45 }
 0x274   : > { %3013 = vmatprep.subr.mxu1 %v2753_v2 }
 0x276   : > { %2919 = vmatmul.mubr.f32.gmra.mrb[8].mxu1 %v2741_v5 }
 0x277   : > { %2991 = vmatprep.mubr.f32.mxu1 %v6665_v45 }
 0x27a   : > { %2995 = vmatmul.mubr.f32.vlgmr.msra.gmra.mrb[6].mxu1 %v2731_v58 }
 0x27b   : > { %3017 = vmatpush1.msra.mxu1 %v2759_v13  ;;  %3000 = vmatprep.mubr.f32.mxu1 %v6665_v45 }
 0x27c   : > { %3096 = vmatprep.subr.mxu1 %v2662_v28 }
 0x27e   : > { %3004 = vmatmul.mubr.f32.gmra.mrb[8].mxu1 %v2742_v55 }
 0x27f   : > { %3080 = vmatprep.mubr.f32.mxu1 %v6665_v45 }
 0x282   : > { %3082 = vmatmul.mubr.f32.vlgmr.msra.gmra.mrb[6].mxu1 %v2729_v54 }
 0x283   : > { %3098 = vmatpush1.msra.mxu1 %v2664_v37  ;;  %3087 = vmatprep.mubr.f32.mxu1 %v6665_v45 }
 0x286   : > { %3089 = vmatmul.mubr.f32.gmra.mrb[8].mxu1 %v2740_v21 }
 0x287   : > { %3161 = vmatprep.mubr.f32.mxu1 %v6665_v45 }
 0x28a   : > { %3163 = vmatmul.mubr.f32.vlgmr.msra.gmra.mrb[6].mxu1 %v2729_v54 }
 0x28b   : > { %3168 = vmatprep.mubr.f32.mxu1 %v6665_v45 }
 0x28e   : > { %3170 = vmatmul.mubr.f32.gmra.mrb[8].mxu1 %v2740_v21 }
 0x35d   : > { %v3164_v27 = vpop.f32.mrb[6].mxu1 }
 0x35e   : > { %v3176_v39 = vadd.f32 %v6249_v41, %v3164_v27  ;;  %v3166_v52 = vpop.f32.mrb[7].mxu1 }
 0x35f   : > { %v3182_v53 = vadd.f32 %v4520_v49, %v3166_v52  ;;  %3193 = sbr.rel (!%p6666_p6) target bundleno = 899 (0x383), region = 52 }
 0x360   : > { %3178 = vst [vmem:[%s6251_s22] sm:$0xff] %v3176_v39 }
 0x361   : > { %3184 = vst [vmem:[%s6251_s22 + $0x10] sm:$0xff] %v3182_v53  ;;  %v3171_v18 = vpop.f32.mrb[8].mxu1 }
 0x362   : > { %v3177_v45 = vadd.f32 %v6254_v22, %v3171_v18  ;;  %v3173_v63 = vpop.f32.mrb[9].mxu1 }
 0x363   : > { %v3183_v8 = vadd.f32 %v4519_v51, %v3173_v63 }
 0x364   : > { %3179 = vst [vmem:[%s6251_s22 + $0x18] sm:$0xff] %v3177_v45 }
 0x365   : > { %3185 = vst [vmem:[%s6251_s22 + $0x28] sm:$0xff] %v3183_v8 }
 0x366   : > { %s6673_s14 = smov (!%p3196_p9, %s3195_s14), 2 }
 0x367   : > { %s6292_s15 = smul.u32 384, %s6673_s14 }
 0x369   : > { %s3201_s16 = ssub.s32 768, %s6292_s15 }
 0x36a   : > { %3202 = vsyncadd %s6287_s13, %s3201_s16  ;;  %p3293_p10 = scmp.ne.s32.totalorder %s6292_s15, 0  ;;  %s4578_s17 = smul.u32 768, %s4795_s0 }
 0x36b   : > { %s3208_s18 = sshll.u32 %s6251_s22, 4  ;;  %s4733_s21 = smov [#allocation6]   ;;  %s6304_s18 = int_to_ptr.vmem [resolvable:$true] %s3208_s18 }
 0x36c   : > { %s6302_s20 = scalar_lea.hbm %s6354_s6, %s4578_s17  ;;  %s4661_s10 = scalar_lea.vmem %s6304_s18, %s6292_s15 }
 0x36d   : > { %p4662_p12 = scmp.ne.s32.totalorder %s6304_s18, %s4661_s10  ;;  %s4665_s27 = sshll.u32 %s4733_s21, 4  ;;  %s4666_s27 = int_to_ptr.vmem [resolvable:$false] %s4665_s27 }
 0x36e   : > { %s4667_s0 = scalar_lea.vmem %s4666_s27, 1536  ;;  %p4668_p4 = scmp.lt.s32.totalorder %s6304_s18, %s4666_s27 }
 0x36f   : > { %p4663_p2 = pnand %p4662_p12, %p3293_p10  ;;  %p4669_p7 = scmp.lt.s32.totalorder %s4667_s0, %s4661_s10 }
 0x371   : > { %p4664_p3 = pneg %p4663_p2  ;;  %p4670_p8 = por %p4669_p7, %p4668_p4 }
 0x373   : > { %p4671_p11 = pnand %p4670_p8, %p4664_p3 }
 0x375   : > { %4674 = shalt.err (!%p4671_p11)
}
 0x376   : > { %s4675_s22 = scalar_lea.hbm %s6302_s20, %s6292_s15  ;;  %s4679_s11 = scalar_lea.hbm %s6354_s6, 1920 }
 0x377   : > { %p4676_p13 = scmp.ne.s32.totalorder %s6302_s20, %s4675_s22  ;;  %p4680_p5 = scmp.lt.u32.totalorder %s6302_s20, %s6354_s6 }
 0x378   : > { %p4681_p6 = scmp.lt.u32.totalorder %s4679_s11, %s4675_s22  ;;  %p4683_p12 = scmp.lt.u32.totalorder %s4675_s22, %s6302_s20 }
 0x379   : > { %p4677_p1 = pnand %p4676_p13, %p3293_p10 }
 0x37a   : > { %p4682_p9 = por %p4681_p6, %p4680_p5 }
 0x37b   : > { %p4678_p0 = pneg %p4677_p1 }
 0x37c   : > { %p4684_p2 = por %p4683_p12, %p4682_p9 }
 0x37e   : > { %p4685_p3 = pnand %p4684_p2, %p4678_p0 }
 0x380   : > { %4688 = shalt.err (!%p4685_p3)
}
 0x381   : > { %s4734_s16 = smov 384   ;;  %s4735_s17 = smov 24  }
 0x382   : > { %3214 = dma.vmem_to_hbm [thread:$0]  (%p3293_p10), %s6304_s18, %s6292_s15, %s6302_s20, %s6287_s13, %s4734_s16, %s4734_s16, %s4735_s17  }
 0x383 PF: > { %p4594_p4 = scmp.ge.s32.totalorder %s4727_s26, 2  ;;  %s3223_s8 = sand.u32 1, %s4715_s23  }
 0x384   : > { %p6667_p7 = scmp.ne.s32.totalorder %s6477_s9, 0  ;;  %s3224_s19 = scalar_lea.sflag [#allocation5], %s3223_s8 }
 0x386   : > { %p4589_p8 = pnand %p4594_p4, %p6667_p7 }
 0x388   : > { %4710 = dma.done.wait (!%p4589_p8), %s3224_s19, 768  }
 0x389   : > { %4712 = vsyncadd (!%p4589_p8), %s3224_s19, 4294966528  ;;  %p18_p11 = scmp.ge.s32.totalorder %s4799_s28, 5   ;;  %s6668_s23 = smov %s4719_s24 }
 0x38a   : > { %s6669_s24 = smov %s4723_s25  ;;  %s6670_s25 = smov %s4810_s7 }
 0x38b   : > { %s6671_s26 = smov %s4799_s28  ;;  %20 = sbr.rel (!%p18_p11) target bundleno = 6 (0x6), region = 84 }
 0x392   :  { %3229 = vsyncpa [#allocation4], 1 }
 0x393   :  { %3231 = vsyncpa [#allocation4 + $0x1], 1 }
 0x394   :  { %3232 = vsyncpa [#allocation5], 1 }
 0x395   :  { %3234 = vsyncpa [#allocation5 + $0x1], 1 }

</bundles_post_ra>
